<compile_context>
chip_gen: v7x
topology: tpu7x:2x2x1
jax: 0.10.0
libtpu: 0.0.40
codegen_flags: <defaults>
</compile_context>

<pallas_src>
import functools

import numpy as np
import jax
import jax.numpy as jnp
from jax.experimental import pallas as pl
from jax.experimental.pallas import tpu as pltpu

LANES = 128


# ---------------------------------------------------------------------------
# Fused forward-pass kernel (one grid step = one batch tile of TB images)
# ---------------------------------------------------------------------------
def _net_kernel(p1_ref, w1_ref, b1_ref, w2_ref, b2_ref,
                wf1_ref, bf1_ref, wf2_ref, bf2_ref,
                out_ref, h1_ref, acc2_ref, *, tb):
    """Fused Net forward for one batch tile.

    p1_ref : (24*tb, 256) bf16  conv1 im2row slab; rows = [di, Y, t], cols ki*28+v (140 real)
    w1_ref : (2, 256, 128) bf16 conv1 RHS per dj; out lane = X*10+c (120 real)
    b1_ref : (1, 128)      f32  conv1 bias spread over X*10+c
    w2_ref : (5, 128, 256) bf16 conv2 RHS per ki; in lane X*10+cin, out lane x*20+cout (160 real)
    b2_ref : (1, 256)      f32  conv2 bias spread over x*20+cout
    wf1_ref: (4, 256, 128) bf16 fc1 weights per pooled-row ph; in lane 40*pw+cout, out 0..49
    bf1_ref: (1, 128)      f32
    wf2_ref: (128, 128)    bf16
    bf2_ref: (1, 128)      f32
    out_ref: (tb, 128)     f32  logits in lanes 0..9
    h1_ref : (12*tb, 128)  bf16 scratch: pool1+relu output, row = Y*tb + t
    acc2_ref:(8*tb, 256)   f32  scratch: conv2 accumulator, row = y*tb + t
    """
    n1 = 12 * tb          # pool1 rows per tile
    n2 = 8 * tb           # valid conv2 rows per tile

    # ---- conv1: 2 matmuls (dj=0/1); rows 0..n1-1 are di=0, rows n1.. are di=1 ----
    p = p1_ref[...]
    c0 = jnp.dot(p, w1_ref[0], preferred_element_type=jnp.float32)   # (24tb,128)
    c1 = jnp.dot(p, w1_ref[1], preferred_element_type=jnp.float32)

    # ---- pool1 (2x2 max over the four di/dj candidates) + bias + relu, store bf16 ----
    h1 = jnp.maximum(jnp.maximum(c0[:n1], c0[n1:]),
                     jnp.maximum(c1[:n1], c1[n1:]))
    h1 = jnp.maximum(h1 + b1_ref[...], 0.0)
    h1_ref[...] = h1.astype(jnp.bfloat16)

    # ---- conv2: 5 contiguous shifted-slice matmuls, packed K/N, scratch accumulate ----
    for ki in range(5):
        lhs = h1_ref[pl.ds(ki * tb, n2), :]                          # rows (y+ki, t)
        d = jnp.dot(lhs, w2_ref[ki], preferred_element_type=jnp.float32)
        if ki == 0:
            acc2_ref[...] = d
        else:
            acc2_ref[...] += d

    # ---- pool2 (2x2) + bias + relu, contracted straight into fc1 (flatten folded) ----
    z1 = jnp.zeros((tb, LANES), jnp.float32)
    zero20 = jnp.zeros((tb, 20), jnp.float32)                        # hoisted broadcast
    for ph in range(4):
        r0 = acc2_ref[pl.ds((2 * ph) * tb, tb), :]                   # rows y=2ph
        r1 = acc2_ref[pl.ds((2 * ph + 1) * tb, tb), :]               # rows y=2ph+1
        m = jnp.maximum(r0, r1) + b2_ref[...]                        # (tb,256)
        # x-pair max: pooled value for (pw,co) lands at lane 40*pw+co; other lanes are
        # finite junk multiplied by zero fc1 weight rows.
        msh = jnp.concatenate([m[:, 20:], zero20], axis=1)
        mx = jnp.maximum(jnp.maximum(m, msh), 0.0).astype(jnp.bfloat16)
        z1 = z1 + jnp.dot(mx, wf1_ref[ph], preferred_element_type=jnp.float32)

    # ---- fc1 bias/relu, then fc2 ----
    z1 = jnp.maximum(z1 + bf1_ref[...], 0.0).astype(jnp.bfloat16)
    out_ref[...] = (jnp.dot(z1, wf2_ref[...], preferred_element_type=jnp.float32)
                    + bf2_ref[...])
    # TODO(synk): Dropout2d layers are identity here (inference/eval semantics).


# ---------------------------------------------------------------------------
# One-time weight repacking (hoisted off the per-call path)
# ---------------------------------------------------------------------------
def prepare_params(params):
    w1, b1, w2, b2, wf1, bf1, wf2, bf2 = (np.asarray(a, np.float32) for a in params)

    # conv1 RHS: Wr[dj, ki*28+v, X*10+c] = w1[c,0,ki, v-2X-dj] on the valid band.
    w1s = np.zeros((2, 256, 128), np.float32)
    for dj in range(2):
        for ki in range(5):
            for kj in range(5):
                for X in range(12):
                    v = 2 * X + dj + kj
                    w1s[dj, ki * 28 + v, X * 10:X * 10 + 10] = w1[:, 0, ki, kj]
    b1p = np.zeros((1, 128), np.float32)
    b1p[0, :120] = np.tile(b1, 12)

    # conv2 RHS: W2[ki, X*10+cin, x*20+co] = w2[co,cin,ki,X-x] on the valid band.
    w2s = np.zeros((5, 128, 256), np.float32)
    for ki in range(5):
        for kj in range(5):
            for x in range(8):
                X = x + kj
                w2s[ki, X * 10:X * 10 + 10, x * 20:x * 20 + 20] = w2[:, :, ki, kj].T
    b2p = np.zeros((1, 256), np.float32)
    b2p[0, :160] = np.tile(b2, 8)

    # fc1: torch flatten index co*16 + ph*4 + pw folded into the weight columns.
    wf1s = np.zeros((4, 256, 128), np.float32)
    for ph in range(4):
        for pw in range(4):
            for co in range(20):
                wf1s[ph, 40 * pw + co, :50] = wf1[:, co * 16 + ph * 4 + pw]
    bf1p = np.zeros((1, 128), np.float32)
    bf1p[0, :50] = bf1

    wf2s = np.zeros((128, 128), np.float32)
    wf2s[:50, :10] = wf2.T
    bf2p = np.zeros((1, 128), np.float32)
    bf2p[0, :10] = bf2

    bf16 = lambda a: jnp.asarray(a, jnp.bfloat16)
    f32 = lambda a: jnp.asarray(a, jnp.float32)
    return (bf16(w1s), f32(b1p), bf16(w2s), f32(b2p),
            bf16(wf1s), f32(bf1p), bf16(wf2s), f32(bf2p))


# ---------------------------------------------------------------------------
# Per-call input plumbing + pallas_call wrapper
# ---------------------------------------------------------------------------
def _pick_tile(batch):
    if batch <= 32:
        return batch
    for d in (32, 16, 8):            # keep (8,128)-aligned output blocks; VMEM-safe on v7x too
        if batch % d == 0:
            return d
    return batch


def _build_conv1_lhs(x, tb):
    """(B,1,28,28) f32 -> (24*B, 256) bf16 conv1 im2row slab, rows grouped per batch tile."""
    B = x.shape[0]
    g = B // tb
    img = x[:, 0]                                              # (B, 28, 28)
    rows = [img[:, s:s + 23:2, :] for s in range(6)]           # image rows 2Y+s, (B,12,28)
    slabs = [jnp.concatenate([rows[di + ki] for ki in range(5)], axis=-1)
             for di in (0, 1)]                                 # (B,12,140): cols ki*28+v
    p = jnp.stack(slabs, axis=0)                               # (2, B, 12, 140)
    p = p.reshape(2, g, tb, 12, 140).transpose(1, 0, 3, 2, 4)  # (g, di, Y, t, col)
    p = p.reshape(g * 24 * tb, 140)
    return jnp.pad(p, ((0, 0), (0, 116))).astype(jnp.bfloat16)


def net_forward(x, prep, *, tb=None):
    """x: (B, 1, 28, 28) float32 (NCHW). Returns logits (B, 10) float32."""
    B = x.shape[0]
    if tb is None:
        tb = _pick_tile(B)
    assert B % tb == 0
    g = B // tb

    p1 = _build_conv1_lhs(x, tb)
    w1s, b1p, w2s, b2p, wf1s, bf1p, wf2s, bf2p = prep

    out = pl.pallas_call(
        functools.partial(_net_kernel, tb=tb),
        out_shape=jax.ShapeDtypeStruct((B, LANES), jnp.float32),
        grid=(g,),
        in_specs=[
            pl.BlockSpec((24 * tb, 256), lambda i: (i, 0)),      # per-tile conv1 slab
            pl.BlockSpec((2, 256, 128), lambda i: (0, 0, 0)),    # weights: whole-array blocks
            pl.BlockSpec((1, 128), lambda i: (0, 0)),
            pl.BlockSpec((5, 128, 256), lambda i: (0, 0, 0)),
            pl.BlockSpec((1, 256), lambda i: (0, 0)),
            pl.BlockSpec((4, 256, 128), lambda i: (0, 0, 0)),
            pl.BlockSpec((1, 128), lambda i: (0, 0)),
            pl.BlockSpec((128, 128), lambda i: (0, 0)),
            pl.BlockSpec((1, 128), lambda i: (0, 0)),
        ],
        out_specs=pl.BlockSpec((tb, LANES), lambda i: (i, 0)),
        scratch_shapes=[
            pltpu.VMEM((12 * tb, LANES), jnp.bfloat16),          # pool1 output (bf16)
            pltpu.VMEM((8 * tb, 256), jnp.float32),              # conv2 accumulator
        ],
        compiler_params=pltpu.CompilerParams(dimension_semantics=("parallel",)),
    )(p1, w1s, b1p, w2s, b2p, wf1s, bf1p, wf2s, bf2p)
    return out[:, :10]


# ---------------------------------------------------------------------------
# Deterministic parameter construction (same shapes as the torch module)
# ---------------------------------------------------------------------------
def init_params(key):
    ks = jax.random.split(key, 8)
    scale = 0.05
    w1 = scale * jax.random.normal(ks[0], (10, 1, 5, 5), jnp.float32)
    b1 = scale * jax.random.normal(ks[1], (10,), jnp.float32)
    w2 = scale * jax.random.normal(ks[2], (20, 10, 5, 5), jnp.float32)
    b2 = scale * jax.random.normal(ks[3], (20,), jnp.float32)
    wf1 = scale * jax.random.normal(ks[4], (50, 320), jnp.float32)
    bf1 = scale * jax.random.normal(ks[5], (50,), jnp.float32)
    wf2 = scale * jax.random.normal(ks[6], (10, 50), jnp.float32)
    bf2 = scale * jax.random.normal(ks[7], (10,), jnp.float32)
    return (w1, b1, w2, b2, wf1, bf1, wf2, bf2)


if __name__ == "__main__":
    key = jax.random.PRNGKey(0)
    k_x, k_p = jax.random.split(key)
    # Input shape fixed by the architecture (320 = 20*4*4 requires 1x28x28).
    x = jax.random.normal(k_x, (2, 1, 28, 28), jnp.float32)
    params = init_params(k_p)

    prep = prepare_params(params)           # one-time weight repack (off the hot path)
    fwd = jax.jit(net_forward)
    out = fwd(x, prep)
    jax.block_until_ready(out)
    assert out.shape == (2, 10) and out.dtype == jnp.float32
    assert bool(jnp.all(jnp.isfinite(out)))
    print("KERNEL_OK")
</pallas_src>

<mosaic_0001>
module attributes {stable_mosaic.version = 11 : i64} {
  func.func @_net_kernel(%arg0: i32, %arg1: memref<48x256xbf16, #tpu.memory_space<vmem>>, %arg2: memref<2x256x128xbf16, #tpu.memory_space<vmem>>, %arg3: memref<1x128xf32, #tpu.memory_space<vmem>>, %arg4: memref<5x128x256xbf16, #tpu.memory_space<vmem>>, %arg5: memref<1x256xf32, #tpu.memory_space<vmem>>, %arg6: memref<4x256x128xbf16, #tpu.memory_space<vmem>>, %arg7: memref<1x128xf32, #tpu.memory_space<vmem>>, %arg8: memref<128x128xbf16, #tpu.memory_space<vmem>>, %arg9: memref<1x128xf32, #tpu.memory_space<vmem>>, %arg10: memref<2x128xf32, #tpu.memory_space<vmem>>, %arg11: memref<24x128xbf16, #tpu.memory_space<vmem>>, %arg12: memref<16x256xf32, #tpu.memory_space<vmem>>) attributes {dimension_semantics = [#tpu.dimension_semantics<parallel>], iteration_bounds = array<i64: 1>, scalar_prefetch = 0 : i64, scratch_operands = 2 : i64, tpu.core_type = #tpu.core_type<tc>, window_params = [{transform_indices = @transform_0, window_bounds = array<i64: 48, 256>}, {pipeline_mode = #tpu.pipeline_mode<synchronous>, transform_indices = @transform_1, window_bounds = array<i64: 2, 256, 128>}, {pipeline_mode = #tpu.pipeline_mode<synchronous>, transform_indices = @transform_2, window_bounds = array<i64: 1, 128>}, {pipeline_mode = #tpu.pipeline_mode<synchronous>, transform_indices = @transform_3, window_bounds = array<i64: 5, 128, 256>}, {pipeline_mode = #tpu.pipeline_mode<synchronous>, transform_indices = @transform_4, window_bounds = array<i64: 1, 256>}, {pipeline_mode = #tpu.pipeline_mode<synchronous>, transform_indices = @transform_5, window_bounds = array<i64: 4, 256, 128>}, {pipeline_mode = #tpu.pipeline_mode<synchronous>, transform_indices = @transform_6, window_bounds = array<i64: 1, 128>}, {pipeline_mode = #tpu.pipeline_mode<synchronous>, transform_indices = @transform_7, window_bounds = array<i64: 128, 128>}, {pipeline_mode = #tpu.pipeline_mode<synchronous>, transform_indices = @transform_8, window_bounds = array<i64: 1, 128>}, {transform_indices = @transform_9, window_bounds = array<i64: 2, 128>}]} {
    %c0 = arith.constant 0 : index
    %c0_0 = arith.constant 0 : index
    %0 = vector.load %arg1[%c0, %c0_0] : memref<48x256xbf16, #tpu.memory_space<vmem>>, vector<48x256xbf16>
    %c0_1 = arith.constant 0 : index
    %c0_2 = arith.constant 0 : index
    %c0_3 = arith.constant 0 : index
    %1 = vector.load %arg2[%c0_1, %c0_2, %c0_3] : memref<2x256x128xbf16, #tpu.memory_space<vmem>>, vector<1x256x128xbf16>
    %2 = vector.shape_cast %1 : vector<1x256x128xbf16> to vector<256x128xbf16>
    %cst = arith.constant dense<0.000000e+00> : vector<48x128xf32>
    %3 = tpu.matmul %0, %2, %cst {dimension_numbers = #tpu.dot_dimension_numbers<[1], [0], [0], [1], [0, 0, 1, 1], [], []>} : vector<48x256xbf16>, vector<256x128xbf16>, vector<48x128xf32> -> vector<48x128xf32>
    %c1 = arith.constant 1 : index
    %c0_4 = arith.constant 0 : index
    %c0_5 = arith.constant 0 : index
    %4 = vector.load %arg2[%c1, %c0_4, %c0_5] : memref<2x256x128xbf16, #tpu.memory_space<vmem>>, vector<1x256x128xbf16>
    %5 = vector.shape_cast %4 : vector<1x256x128xbf16> to vector<256x128xbf16>
    %cst_6 = arith.constant dense<0.000000e+00> : vector<48x128xf32>
    %6 = tpu.matmul %0, %5, %cst_6 {dimension_numbers = #tpu.dot_dimension_numbers<[1], [0], [0], [1], [0, 0, 1, 1], [], []>} : vector<48x256xbf16>, vector<256x128xbf16>, vector<48x128xf32> -> vector<48x128xf32>
    %7 = vector.extract_strided_slice %3 {offsets = [0, 0], sizes = [24, 128], strides = [1, 1]} : vector<48x128xf32> to vector<24x128xf32>
    %8 = vector.extract_strided_slice %3 {offsets = [24, 0], sizes = [24, 128], strides = [1, 1]} : vector<48x128xf32> to vector<24x128xf32>
    %9 = arith.maximumf %7, %8 : vector<24x128xf32>
    %10 = vector.extract_strided_slice %6 {offsets = [0, 0], sizes = [24, 128], strides = [1, 1]} : vector<48x128xf32> to vector<24x128xf32>
    %11 = vector.extract_strided_slice %6 {offsets = [24, 0], sizes = [24, 128], strides = [1, 1]} : vector<48x128xf32> to vector<24x128xf32>
    %12 = arith.maximumf %10, %11 : vector<24x128xf32>
    %13 = arith.maximumf %9, %12 : vector<24x128xf32>
    %c0_7 = arith.constant 0 : index
    %c0_8 = arith.constant 0 : index
    %14 = vector.load %arg3[%c0_7, %c0_8] : memref<1x128xf32, #tpu.memory_space<vmem>>, vector<1x128xf32>
    %15 = vector.broadcast %14 : vector<1x128xf32> to vector<24x128xf32>
    %16 = arith.addf %13, %15 : vector<24x128xf32>
    %cst_9 = arith.constant 0.000000e+00 : f32
    %17 = vector.broadcast %cst_9 : f32 to vector<24x128xf32>
    %18 = arith.maximumf %16, %17 : vector<24x128xf32>
    %19 = arith.truncf %18 : vector<24x128xf32> to vector<24x128xbf16>
    %c0_10 = arith.constant 0 : index
    %c0_11 = arith.constant 0 : index
    %20 = vector.load %arg11[%c0_10, %c0_11] : memref<24x128xbf16, #tpu.memory_space<vmem>>, vector<24x128xbf16>
    tpu.vector_store %arg11[%c0_10, %c0_11], %19 {strides = array<i32>} : memref<24x128xbf16, #tpu.memory_space<vmem>>, vector<24x128xbf16>,
    %c0_12 = arith.constant 0 : index
    %c0_13 = arith.constant 0 : index
    %21 = vector.load %arg11[%c0_12, %c0_13] : memref<24x128xbf16, #tpu.memory_space<vmem>>, vector<16x128xbf16>
    %c0_14 = arith.constant 0 : index
    %c0_15 = arith.constant 0 : index
    %c0_16 = arith.constant 0 : index
    %22 = vector.load %arg4[%c0_14, %c0_15, %c0_16] : memref<5x128x256xbf16, #tpu.memory_space<vmem>>, vector<1x128x256xbf16>
    %23 = vector.shape_cast %22 : vector<1x128x256xbf16> to vector<128x256xbf16>
    %cst_17 = arith.constant dense<0.000000e+00> : vector<16x256xf32>
    %24 = tpu.matmul %21, %23, %cst_17 {dimension_numbers = #tpu.dot_dimension_numbers<[1], [0], [0], [1], [0, 0, 1, 1], [], []>} : vector<16x128xbf16>, vector<128x256xbf16>, vector<16x256xf32> -> vector<16x256xf32>
    %c0_18 = arith.constant 0 : index
    %c0_19 = arith.constant 0 : index
    %25 = vector.load %arg12[%c0_18, %c0_19] : memref<16x256xf32, #tpu.memory_space<vmem>>, vector<16x256xf32>
    tpu.vector_store %arg12[%c0_18, %c0_19], %24 {strides = array<i32>} : memref<16x256xf32, #tpu.memory_space<vmem>>, vector<16x256xf32>,
    %c2 = arith.constant 2 : index
    %c0_20 = arith.constant 0 : index
    %26 = vector.load %arg11[%c2, %c0_20] : memref<24x128xbf16, #tpu.memory_space<vmem>>, vector<16x128xbf16>
    %c1_21 = arith.constant 1 : index
    %c0_22 = arith.constant 0 : index
    %c0_23 = arith.constant 0 : index
    %27 = vector.load %arg4[%c1_21, %c0_22, %c0_23] : memref<5x128x256xbf16, #tpu.memory_space<vmem>>, vector<1x128x256xbf16>
    %28 = vector.shape_cast %27 : vector<1x128x256xbf16> to vector<128x256xbf16>
    %cst_24 = arith.constant dense<0.000000e+00> : vector<16x256xf32>
    %29 = tpu.matmul %26, %28, %cst_24 {dimension_numbers = #tpu.dot_dimension_numbers<[1], [0], [0], [1], [0, 0, 1, 1], [], []>} : vector<16x128xbf16>, vector<128x256xbf16>, vector<16x256xf32> -> vector<16x256xf32>
    %c0_25 = arith.constant 0 : index
    %c0_26 = arith.constant 0 : index
    %30 = vector.load %arg12[%c0_25, %c0_26] : memref<16x256xf32, #tpu.memory_space<vmem>>, vector<16x256xf32>
    %31 = arith.addf %30, %29 : vector<16x256xf32>
    %c0_27 = arith.constant 0 : index
    %c0_28 = arith.constant 0 : index
    %32 = vector.load %arg12[%c0_27, %c0_28] : memref<16x256xf32, #tpu.memory_space<vmem>>, vector<16x256xf32>
    tpu.vector_store %arg12[%c0_27, %c0_28], %31 {strides = array<i32>} : memref<16x256xf32, #tpu.memory_space<vmem>>, vector<16x256xf32>,
    %c4 = arith.constant 4 : index
    %c0_29 = arith.constant 0 : index
    %33 = vector.load %arg11[%c4, %c0_29] : memref<24x128xbf16, #tpu.memory_space<vmem>>, vector<16x128xbf16>
    %c2_30 = arith.constant 2 : index
    %c0_31 = arith.constant 0 : index
    %c0_32 = arith.constant 0 : index
    %34 = vector.load %arg4[%c2_30, %c0_31, %c0_32] : memref<5x128x256xbf16, #tpu.memory_space<vmem>>, vector<1x128x256xbf16>
    %35 = vector.shape_cast %34 : vector<1x128x256xbf16> to vector<128x256xbf16>
    %cst_33 = arith.constant dense<0.000000e+00> : vector<16x256xf32>
    %36 = tpu.matmul %33, %35, %cst_33 {dimension_numbers = #tpu.dot_dimension_numbers<[1], [0], [0], [1], [0, 0, 1, 1], [], []>} : vector<16x128xbf16>, vector<128x256xbf16>, vector<16x256xf32> -> vector<16x256xf32>
    %c0_34 = arith.constant 0 : index
    %c0_35 = arith.constant 0 : index
    %37 = vector.load %arg12[%c0_34, %c0_35] : memref<16x256xf32, #tpu.memory_space<vmem>>, vector<16x256xf32>
    %38 = arith.addf %37, %36 : vector<16x256xf32>
    %c0_36 = arith.constant 0 : index
    %c0_37 = arith.constant 0 : index
    %39 = vector.load %arg12[%c0_36, %c0_37] : memref<16x256xf32, #tpu.memory_space<vmem>>, vector<16x256xf32>
    tpu.vector_store %arg12[%c0_36, %c0_37], %38 {strides = array<i32>} : memref<16x256xf32, #tpu.memory_space<vmem>>, vector<16x256xf32>,
    %c6 = arith.constant 6 : index
    %c0_38 = arith.constant 0 : index
    %40 = vector.load %arg11[%c6, %c0_38] : memref<24x128xbf16, #tpu.memory_space<vmem>>, vector<16x128xbf16>
    %c3 = arith.constant 3 : index
    %c0_39 = arith.constant 0 : index
    %c0_40 = arith.constant 0 : index
    %41 = vector.load %arg4[%c3, %c0_39, %c0_40] : memref<5x128x256xbf16, #tpu.memory_space<vmem>>, vector<1x128x256xbf16>
    %42 = vector.shape_cast %41 : vector<1x128x256xbf16> to vector<128x256xbf16>
    %cst_41 = arith.constant dense<0.000000e+00> : vector<16x256xf32>
    %43 = tpu.matmul %40, %42, %cst_41 {dimension_numbers = #tpu.dot_dimension_numbers<[1], [0], [0], [1], [0, 0, 1, 1], [], []>} : vector<16x128xbf16>, vector<128x256xbf16>, vector<16x256xf32> -> vector<16x256xf32>
    %c0_42 = arith.constant 0 : index
    %c0_43 = arith.constant 0 : index
    %44 = vector.load %arg12[%c0_42, %c0_43] : memref<16x256xf32, #tpu.memory_space<vmem>>, vector<16x256xf32>
    %45 = arith.addf %44, %43 : vector<16x256xf32>
    %c0_44 = arith.constant 0 : index
    %c0_45 = arith.constant 0 : index
    %46 = vector.load %arg12[%c0_44, %c0_45] : memref<16x256xf32, #tpu.memory_space<vmem>>, vector<16x256xf32>
    tpu.vector_store %arg12[%c0_44, %c0_45], %45 {strides = array<i32>} : memref<16x256xf32, #tpu.memory_space<vmem>>, vector<16x256xf32>,
    %c8 = arith.constant 8 : index
    %c0_46 = arith.constant 0 : index
    %47 = vector.load %arg11[%c8, %c0_46] : memref<24x128xbf16, #tpu.memory_space<vmem>>, vector<16x128xbf16>
    %c4_47 = arith.constant 4 : index
    %c0_48 = arith.constant 0 : index
    %c0_49 = arith.constant 0 : index
    %48 = vector.load %arg4[%c4_47, %c0_48, %c0_49] : memref<5x128x256xbf16, #tpu.memory_space<vmem>>, vector<1x128x256xbf16>
    %49 = vector.shape_cast %48 : vector<1x128x256xbf16> to vector<128x256xbf16>
    %cst_50 = arith.constant dense<0.000000e+00> : vector<16x256xf32>
    %50 = tpu.matmul %47, %49, %cst_50 {dimension_numbers = #tpu.dot_dimension_numbers<[1], [0], [0], [1], [0, 0, 1, 1], [], []>} : vector<16x128xbf16>, vector<128x256xbf16>, vector<16x256xf32> -> vector<16x256xf32>
    %c0_51 = arith.constant 0 : index
    %c0_52 = arith.constant 0 : index
    %51 = vector.load %arg12[%c0_51, %c0_52] : memref<16x256xf32, #tpu.memory_space<vmem>>, vector<16x256xf32>
    %52 = arith.addf %51, %50 : vector<16x256xf32>
    %c0_53 = arith.constant 0 : index
    %c0_54 = arith.constant 0 : index
    %53 = vector.load %arg12[%c0_53, %c0_54] : memref<16x256xf32, #tpu.memory_space<vmem>>, vector<16x256xf32>
    tpu.vector_store %arg12[%c0_53, %c0_54], %52 {strides = array<i32>} : memref<16x256xf32, #tpu.memory_space<vmem>>, vector<16x256xf32>,
    %cst_55 = arith.constant 0.000000e+00 : f32
    %54 = vector.broadcast %cst_55 : f32 to vector<2x128xf32>
    %cst_56 = arith.constant 0.000000e+00 : f32
    %55 = vector.broadcast %cst_56 : f32 to vector<2x20xf32>
    %c0_57 = arith.constant 0 : index
    %c0_58 = arith.constant 0 : index
    %56 = vector.load %arg12[%c0_57, %c0_58] : memref<16x256xf32, #tpu.memory_space<vmem>>, vector<2x256xf32>
    %c2_59 = arith.constant 2 : index
    %c0_60 = arith.constant 0 : index
    %57 = vector.load %arg12[%c2_59, %c0_60] : memref<16x256xf32, #tpu.memory_space<vmem>>, vector<2x256xf32>
    %58 = arith.maximumf %56, %57 : vector<2x256xf32>
    %c0_61 = arith.constant 0 : index
    %c0_62 = arith.constant 0 : index
    %59 = vector.load %arg5[%c0_61, %c0_62] : memref<1x256xf32, #tpu.memory_space<vmem>>, vector<1x256xf32>
    %60 = vector.broadcast %59 : vector<1x256xf32> to vector<2x256xf32>
    %61 = arith.addf %58, %60 : vector<2x256xf32>
    %62 = vector.extract_strided_slice %61 {offsets = [0, 20], sizes = [2, 236], strides = [1, 1]} : vector<2x256xf32> to vector<2x236xf32>
    %63 = tpu.concatenate %62, %55 in 1 : vector<2x236xf32>, vector<2x20xf32> -> vector<2x256xf32>
    %64 = arith.maximumf %61, %63 : vector<2x256xf32>
    %cst_63 = arith.constant 0.000000e+00 : f32
    %65 = vector.broadcast %cst_63 : f32 to vector<2x256xf32>
    %66 = arith.maximumf %64, %65 : vector<2x256xf32>
    %67 = arith.truncf %66 : vector<2x256xf32> to vector<2x256xbf16>
    %c0_64 = arith.constant 0 : index
    %c0_65 = arith.constant 0 : index
    %c0_66 = arith.constant 0 : index
    %68 = vector.load %arg6[%c0_64, %c0_65, %c0_66] : memref<4x256x128xbf16, #tpu.memory_space<vmem>>, vector<1x256x128xbf16>
    %69 = vector.shape_cast %68 : vector<1x256x128xbf16> to vector<256x128xbf16>
    %cst_67 = arith.constant dense<0.000000e+00> : vector<2x128xf32>
    %70 = tpu.matmul %67, %69, %cst_67 {dimension_numbers = #tpu.dot_dimension_numbers<[1], [0], [0], [1], [0, 0, 1, 1], [], []>} : vector<2x256xbf16>, vector<256x128xbf16>, vector<2x128xf32> -> vector<2x128xf32>
    %71 = arith.addf %54, %70 : vector<2x128xf32>
    %c4_68 = arith.constant 4 : index
    %c0_69 = arith.constant 0 : index
    %72 = vector.load %arg12[%c4_68, %c0_69] : memref<16x256xf32, #tpu.memory_space<vmem>>, vector<2x256xf32>
    %c6_70 = arith.constant 6 : index
    %c0_71 = arith.constant 0 : index
    %73 = vector.load %arg12[%c6_70, %c0_71] : memref<16x256xf32, #tpu.memory_space<vmem>>, vector<2x256xf32>
    %74 = arith.maximumf %72, %73 : vector<2x256xf32>
    %c0_72 = arith.constant 0 : index
    %c0_73 = arith.constant 0 : index
    %75 = vector.load %arg5[%c0_72, %c0_73] : memref<1x256xf32, #tpu.memory_space<vmem>>, vector<1x256xf32>
    %76 = vector.broadcast %75 : vector<1x256xf32> to vector<2x256xf32>
    %77 = arith.addf %74, %76 : vector<2x256xf32>
    %78 = vector.extract_strided_slice %77 {offsets = [0, 20], sizes = [2, 236], strides = [1, 1]} : vector<2x256xf32> to vector<2x236xf32>
    %79 = tpu.concatenate %78, %55 in 1 : vector<2x236xf32>, vector<2x20xf32> -> vector<2x256xf32>
    %80 = arith.maximumf %77, %79 : vector<2x256xf32>
    %cst_74 = arith.constant 0.000000e+00 : f32
    %81 = vector.broadcast %cst_74 : f32 to vector<2x256xf32>
    %82 = arith.maximumf %80, %81 : vector<2x256xf32>
    %83 = arith.truncf %82 : vector<2x256xf32> to vector<2x256xbf16>
    %c1_75 = arith.constant 1 : index
    %c0_76 = arith.constant 0 : index
    %c0_77 = arith.constant 0 : index
    %84 = vector.load %arg6[%c1_75, %c0_76, %c0_77] : memref<4x256x128xbf16, #tpu.memory_space<vmem>>, vector<1x256x128xbf16>
    %85 = vector.shape_cast %84 : vector<1x256x128xbf16> to vector<256x128xbf16>
    %cst_78 = arith.constant dense<0.000000e+00> : vector<2x128xf32>
    %86 = tpu.matmul %83, %85, %cst_78 {dimension_numbers = #tpu.dot_dimension_numbers<[1], [0], [0], [1], [0, 0, 1, 1], [], []>} : vector<2x256xbf16>, vector<256x128xbf16>, vector<2x128xf32> -> vector<2x128xf32>
    %87 = arith.addf %71, %86 : vector<2x128xf32>
    %c8_79 = arith.constant 8 : index
    %c0_80 = arith.constant 0 : index
    %88 = vector.load %arg12[%c8_79, %c0_80] : memref<16x256xf32, #tpu.memory_space<vmem>>, vector<2x256xf32>
    %c10 = arith.constant 10 : index
    %c0_81 = arith.constant 0 : index
    %89 = vector.load %arg12[%c10, %c0_81] : memref<16x256xf32, #tpu.memory_space<vmem>>, vector<2x256xf32>
    %90 = arith.maximumf %88, %89 : vector<2x256xf32>
    %c0_82 = arith.constant 0 : index
    %c0_83 = arith.constant 0 : index
    %91 = vector.load %arg5[%c0_82, %c0_83] : memref<1x256xf32, #tpu.memory_space<vmem>>, vector<1x256xf32>
    %92 = vector.broadcast %91 : vector<1x256xf32> to vector<2x256xf32>
    %93 = arith.addf %90, %92 : vector<2x256xf32>
    %94 = vector.extract_strided_slice %93 {offsets = [0, 20], sizes = [2, 236], strides = [1, 1]} : vector<2x256xf32> to vector<2x236xf32>
    %95 = tpu.concatenate %94, %55 in 1 : vector<2x236xf32>, vector<2x20xf32> -> vector<2x256xf32>
    %96 = arith.maximumf %93, %95 : vector<2x256xf32>
    %cst_84 = arith.constant 0.000000e+00 : f32
    %97 = vector.broadcast %cst_84 : f32 to vector<2x256xf32>
    %98 = arith.maximumf %96, %97 : vector<2x256xf32>
    %99 = arith.truncf %98 : vector<2x256xf32> to vector<2x256xbf16>
    %c2_85 = arith.constant 2 : index
    %c0_86 = arith.constant 0 : index
    %c0_87 = arith.constant 0 : index
    %100 = vector.load %arg6[%c2_85, %c0_86, %c0_87] : memref<4x256x128xbf16, #tpu.memory_space<vmem>>, vector<1x256x128xbf16>
    %101 = vector.shape_cast %100 : vector<1x256x128xbf16> to vector<256x128xbf16>
    %cst_88 = arith.constant dense<0.000000e+00> : vector<2x128xf32>
    %102 = tpu.matmul %99, %101, %cst_88 {dimension_numbers = #tpu.dot_dimension_numbers<[1], [0], [0], [1], [0, 0, 1, 1], [], []>} : vector<2x256xbf16>, vector<256x128xbf16>, vector<2x128xf32> -> vector<2x128xf32>
    %103 = arith.addf %87, %102 : vector<2x128xf32>
    %c12 = arith.constant 12 : index
    %c0_89 = arith.constant 0 : index
    %104 = vector.load %arg12[%c12, %c0_89] : memref<16x256xf32, #tpu.memory_space<vmem>>, vector<2x256xf32>
    %c14 = arith.constant 14 : index
    %c0_90 = arith.constant 0 : index
    %105 = vector.load %arg12[%c14, %c0_90] : memref<16x256xf32, #tpu.memory_space<vmem>>, vector<2x256xf32>
    %106 = arith.maximumf %104, %105 : vector<2x256xf32>
    %c0_91 = arith.constant 0 : index
    %c0_92 = arith.constant 0 : index
    %107 = vector.load %arg5[%c0_91, %c0_92] : memref<1x256xf32, #tpu.memory_space<vmem>>, vector<1x256xf32>
    %108 = vector.broadcast %107 : vector<1x256xf32> to vector<2x256xf32>
    %109 = arith.addf %106, %108 : vector<2x256xf32>
    %110 = vector.extract_strided_slice %109 {offsets = [0, 20], sizes = [2, 236], strides = [1, 1]} : vector<2x256xf32> to vector<2x236xf32>
    %111 = tpu.concatenate %110, %55 in 1 : vector<2x236xf32>, vector<2x20xf32> -> vector<2x256xf32>
    %112 = arith.maximumf %109, %111 : vector<2x256xf32>
    %cst_93 = arith.constant 0.000000e+00 : f32
    %113 = vector.broadcast %cst_93 : f32 to vector<2x256xf32>
    %114 = arith.maximumf %112, %113 : vector<2x256xf32>
    %115 = arith.truncf %114 : vector<2x256xf32> to vector<2x256xbf16>
    %c3_94 = arith.constant 3 : index
    %c0_95 = arith.constant 0 : index
    %c0_96 = arith.constant 0 : index
    %116 = vector.load %arg6[%c3_94, %c0_95, %c0_96] : memref<4x256x128xbf16, #tpu.memory_space<vmem>>, vector<1x256x128xbf16>
    %117 = vector.shape_cast %116 : vector<1x256x128xbf16> to vector<256x128xbf16>
    %cst_97 = arith.constant dense<0.000000e+00> : vector<2x128xf32>
    %118 = tpu.matmul %115, %117, %cst_97 {dimension_numbers = #tpu.dot_dimension_numbers<[1], [0], [0], [1], [0, 0, 1, 1], [], []>} : vector<2x256xbf16>, vector<256x128xbf16>, vector<2x128xf32> -> vector<2x128xf32>
    %119 = arith.addf %103, %118 : vector<2x128xf32>
    %c0_98 = arith.constant 0 : index
    %c0_99 = arith.constant 0 : index
    %120 = vector.load %arg7[%c0_98, %c0_99] : memref<1x128xf32, #tpu.memory_space<vmem>>, vector<1x128xf32>
    %121 = vector.broadcast %120 : vector<1x128xf32> to vector<2x128xf32>
    %122 = arith.addf %119, %121 : vector<2x128xf32>
    %cst_100 = arith.constant 0.000000e+00 : f32
    %123 = vector.broadcast %cst_100 : f32 to vector<2x128xf32>
    %124 = arith.maximumf %122, %123 : vector<2x128xf32>
    %125 = arith.truncf %124 : vector<2x128xf32> to vector<2x128xbf16>
    %c0_101 = arith.constant 0 : index
    %c0_102 = arith.constant 0 : index
    %126 = vector.load %arg8[%c0_101, %c0_102] : memref<128x128xbf16, #tpu.memory_space<vmem>>, vector<128x128xbf16>
    %cst_103 = arith.constant dense<0.000000e+00> : vector<2x128xf32>
    %127 = tpu.matmul %125, %126, %cst_103 {dimension_numbers = #tpu.dot_dimension_numbers<[1], [0], [0], [1], [0, 0, 1, 1], [], []>} : vector<2x128xbf16>, vector<128x128xbf16>, vector<2x128xf32> -> vector<2x128xf32>
    %c0_104 = arith.constant 0 : index
    %c0_105 = arith.constant 0 : index
    %128 = vector.load %arg9[%c0_104, %c0_105] : memref<1x128xf32, #tpu.memory_space<vmem>>, vector<1x128xf32>
    %129 = vector.broadcast %128 : vector<1x128xf32> to vector<2x128xf32>
    %130 = arith.addf %127, %129 : vector<2x128xf32>
    %c0_106 = arith.constant 0 : index
    %c0_107 = arith.constant 0 : index
    %131 = vector.load %arg10[%c0_106, %c0_107] : memref<2x128xf32, #tpu.memory_space<vmem>>, vector<2x128xf32>
    tpu.vector_store %arg10[%c0_106, %c0_107], %130 {strides = array<i32>} : memref<2x128xf32, #tpu.memory_space<vmem>>, vector<2x128xf32>,
    return
  }
  func.func @transform_0(%arg0: i32) -> (i32, i32) {
    %c0_i32 = arith.constant 0 : i32
    %c0_i32_0 = arith.constant 0 : i32
    return %arg0, %c0_i32 : i32, i32
  }
  func.func @transform_1(%arg0: i32) -> (i32, i32, i32) {
    %c0_i32 = arith.constant 0 : i32
    %c0_i32_0 = arith.constant 0 : i32
    %c0_i32_1 = arith.constant 0 : i32
    %c0_i32_2 = arith.constant 0 : i32
    return %c0_i32, %c0_i32_0, %c0_i32_1 : i32, i32, i32
  }
  func.func @transform_2(%arg0: i32) -> (i32, i32) {
    %c0_i32 = arith.constant 0 : i32
    %c0_i32_0 = arith.constant 0 : i32
    %c0_i32_1 = arith.constant 0 : i32
    return %c0_i32, %c0_i32_0 : i32, i32
  }
  func.func @transform_3(%arg0: i32) -> (i32, i32, i32) {
    %c0_i32 = arith.constant 0 : i32
    %c0_i32_0 = arith.constant 0 : i32
    %c0_i32_1 = arith.constant 0 : i32
    %c0_i32_2 = arith.constant 0 : i32
    return %c0_i32, %c0_i32_0, %c0_i32_1 : i32, i32, i32
  }
  func.func @transform_4(%arg0: i32) -> (i32, i32) {
    %c0_i32 = arith.constant 0 : i32
    %c0_i32_0 = arith.constant 0 : i32
    %c0_i32_1 = arith.constant 0 : i32
    return %c0_i32, %c0_i32_0 : i32, i32
  }
  func.func @transform_5(%arg0: i32) -> (i32, i32, i32) {
    %c0_i32 = arith.constant 0 : i32
    %c0_i32_0 = arith.constant 0 : i32
    %c0_i32_1 = arith.constant 0 : i32
    %c0_i32_2 = arith.constant 0 : i32
    return %c0_i32, %c0_i32_0, %c0_i32_1 : i32, i32, i32
  }
  func.func @transform_6(%arg0: i32) -> (i32, i32) {
    %c0_i32 = arith.constant 0 : i32
    %c0_i32_0 = arith.constant 0 : i32
    %c0_i32_1 = arith.constant 0 : i32
    return %c0_i32, %c0_i32_0 : i32, i32
  }
  func.func @transform_7(%arg0: i32) -> (i32, i32) {
    %c0_i32 = arith.constant 0 : i32
    %c0_i32_0 = arith.constant 0 : i32
    %c0_i32_1 = arith.constant 0 : i32
    return %c0_i32, %c0_i32_0 : i32, i32
  }
  func.func @transform_8(%arg0: i32) -> (i32, i32) {
    %c0_i32 = arith.constant 0 : i32
    %c0_i32_0 = arith.constant 0 : i32
    %c0_i32_1 = arith.constant 0 : i32
    return %c0_i32, %c0_i32_0 : i32, i32
  }
  func.func @transform_9(%arg0: i32) -> (i32, i32) {
    %c0_i32 = arith.constant 0 : i32
    %c0_i32_0 = arith.constant 0 : i32
    return %arg0, %c0_i32 : i32, i32
  }
}

</mosaic_0001>

<bundles_post_ra>
// kernel: net_forward.1
= control target key start
LH: loop header
LB: loop body
LE: loop exit
PB: predicated region body
PF: predicated region fallthrough
CT: control target
= control target key end

     0   :  { %14 = vsyncpa [#allocation5], 0  ;;  %s3523_s0 = inlined_call_operand.vmem [shape: bf16[48,256], index: 0, kind: input, shape index: {}]   ;;  %s3524_s1 = inlined_call_operand.hbm [shape: bf16[2,256,128], index: 1, kind: input, shape index: {}]   ;;  %s3525_s2 = inlined_call_operand.vmem [shape: f32[1,128], index: 2, kind: input, shape index: {}]   ;;  %s3526_s3 = inlined_call_operand.vmem [shape: bf16[5,128,256], index: 3, kind: input, shape index: {}]   ;;  %s3527_s4 = inlined_call_operand.vmem [shape: f32[1,256], index: 4, kind: input, shape index: {}]   ;;  %s3528_s5 = inlined_call_operand.hbm [shape: bf16[4,256,128], index: 5, kind: input, shape index: {}]   ;;  %s3529_s6 = inlined_call_operand.vmem [shape: f32[1,128], index: 6, kind: input, shape index: {}]   ;;  %s3530_s7 = inlined_call_operand.vmem [shape: bf16[128,128], index: 7, kind: input, shape index: {}]   ;;  %s3531_s8 = inlined_call_operand.vmem [shape: f32[1,128], index: 8, kind: input, shape index: {}]   ;;  %s3532_s9 = inlined_call_operand.hbm [shape: f32[2,128], index: 9, kind: output, shape index: {}]  }
   0x1   :  { %15 = vsyncpa [#allocation8], 0 }
   0x2   :  { %16 = vsyncpa [#allocation6], 0  ;;  %s3101_s30 = smov [#allocation4]   ;;  %s3029_s13 = scalar_lea.hbm %s3524_s1, 4096 }
   0x3   :  { %s24_s10 = sshll.u32 %s3101_s30, 4  ;;  %p3030_p0 = scmp.ne.s32.totalorder %s3524_s1, %s3029_s13  ;;  %s25_s10 = int_to_ptr.vmem [resolvable:$true] %s24_s10 }
   0x4   :  { %p3033_p1 = scmp.lt.u32.totalorder %s3029_s13, %s3524_s1 }
   0x6   :  { %p3035_p2 = pnand %p3033_p1, %p3030_p0 }
   0x8   :  { %3038 = shalt.err (!%p3035_p2)
}
   0x9   :  { %s3039_s18 = scalar_lea.vmem %s25_s10, 4096  ;;  %p3044_p4 = scmp.lt.s32.totalorder %s25_s10, %s25_s10 }
   0xa   :  { %p3040_p3 = scmp.ne.s32.totalorder %s25_s10, %s3039_s18  ;;  %p3045_p5 = scmp.lt.s32.totalorder %s3039_s18, %s3039_s18 }
   0xc   :  { %p3046_p6 = por %p3045_p5, %p3044_p4 }
   0xe   :  { %p3047_p7 = pnand %p3046_p6, %p3040_p3 }
  0x10   :  { %3050 = shalt.err (!%p3047_p7)
}
  0x11   :  { %s3102_s19 = smov 64   ;;  %s3103_s20 = smov 4  }
  0x12   :  { %30 = dma.hbm_to_vmem [thread:$0]  %s3524_s1, 4096, %s25_s10, [#allocation5], %s3102_s19, %s3102_s19, %s3103_s20  }
  0x13   :  { %s3104_s23 = smov [#allocation7]   ;;  %s3051_s27 = scalar_lea.hbm %s3528_s5, 8192 }
  0x14   :  { %s42_s24 = sshll.u32 %s3104_s23, 4  ;;  %p3052_p8 = scmp.ne.s32.totalorder %s3528_s5, %s3051_s27  ;;  %s43_s24 = int_to_ptr.vmem [resolvable:$true] %s42_s24 }
  0x15   :  { %p3055_p9 = scmp.lt.u32.totalorder %s3051_s27, %s3528_s5 }
  0x17   :  { %p3057_p10 = pnand %p3055_p9, %p3052_p8 }
  0x19   :  { %3060 = shalt.err (!%p3057_p10)
}
  0x1a   :  { %s3061_s12 = scalar_lea.vmem %s43_s24, 8192  ;;  %p3066_p12 = scmp.lt.s32.totalorder %s43_s24, %s43_s24 }
  0x1b   :  { %p3062_p11 = scmp.ne.s32.totalorder %s43_s24, %s3061_s12  ;;  %p3067_p13 = scmp.lt.s32.totalorder %s3061_s12, %s3061_s12 }
  0x1d   :  { %p3068_p0 = por %p3067_p13, %p3066_p12 }
  0x1f   :  { %p3069_p1 = pnand %p3068_p0, %p3062_p11 }
  0x21   :  { %3072 = shalt.err (!%p3069_p1)
}
  0x22   :  { %48 = dma.hbm_to_vmem [thread:$0]  %s3528_s5, 8192, %s43_s24, [#allocation8], %s3102_s19, %s3102_s19, %s3103_s20  }
  0x23   :  { %3095 = dma.done.wait [#allocation5], 4096  }
  0x24   :  { %3096 = vsyncadd [#allocation5], 4294963200 }
  0x25   :  { %3097 = dma.done.wait [#allocation8], 8192  }
  0x26   :  { %3098 = vsyncadd [#allocation8], 4294959104  ;;  %v2788_v0 = vld [vmem:[#allocation4 + $0x40] sm:$0xff]   ;;  %v2792_v4 = vld [vmem:[#allocation4 + $0x48] sm:$0xff]   ;;  %v3105_v54 = vmov 0   ;;  %vm686_vm0 = vcmask 1046528  }
  0x27   :  { %v2789_v1 = vld [vmem:[#allocation4 + $0xc0] sm:$0xff]   ;;  %2558 = vmatprep.subr.bf16.mxu0 %v2788_v0  ;;  %v2793_v5 = vld [vmem:[#allocation4 + $0xc8] sm:$0xff]   ;;  %v2796_v8 = vld [vmem:[#allocation4 + $0x50] sm:$0xff]   ;;  %vm854_vm1 = vcmask 1045504   ;;  %vm1022_vm2 = vcmask 1044480   ;;  %vm1354_vm3 = vcmask 883712  }
  0x28   :  { %v2790_v2 = vld [vmem:[#allocation4] sm:$0xff]   ;;  %2592 = vmatprep.subr.bf16.mxu1 %v2789_v1  ;;  %v2794_v6 = vld [vmem:[#allocation4 + $0x8] sm:$0xff]   ;;  %v2797_v9 = vld [vmem:[#allocation4 + $0xd0] sm:$0xff]   ;;  %vm3108_vm4 = vmmov 0  }
  0x29   :  { %v2791_v3 = vld [vmem:[#allocation4 + $0x80] sm:$0xff]   ;;  %2559 = vmatpush3.bf16.msra.mxu0 %v2790_v2  ;;  %v2795_v7 = vld [vmem:[#allocation4 + $0x88] sm:$0xff]   ;;  %v2798_v10 = vld [vmem:[#allocation4 + $0x10] sm:$0xff]  }
  0x2a   :  { %2593 = vmatpush3.bf16.msra.mxu1 %v2791_v3  ;;  %2560 = vmatprep.subr.bf16.mxu0 %v2792_v4  ;;  %v2799_v11 = vld [vmem:[#allocation4 + $0x90] sm:$0xff]   ;;  %v2800_v12 = vld [vmem:[#allocation4 + $0x58] sm:$0xff]   ;;  %v2804_v16 = vld [vmem:[#allocation4 + $0x60] sm:$0xff]  }
  0x2b   :  { %2594 = vmatprep.subr.bf16.mxu1 %v2793_v5  ;;  %v2801_v13 = vld [vmem:[#allocation4 + $0xd8] sm:$0xff]   ;;  %v2805_v17 = vld [vmem:[#allocation4 + $0xe0] sm:$0xff]   ;;  %v2808_v20 = vld [vmem:[#allocation4 + $0x68] sm:$0xff]  }
  0x2c   :  { %v2802_v14 = vld [vmem:[#allocation4 + $0x18] sm:$0xff]   ;;  %v2806_v18 = vld [vmem:[#allocation4 + $0x20] sm:$0xff]   ;;  %v2809_v21 = vld [vmem:[#allocation4 + $0xe8] sm:$0xff]  }
  0x2d   :  { %2561 = vmatpush3.bf16.msra.mxu0 %v2794_v6  ;;  %v2803_v15 = vld [vmem:[#allocation4 + $0x98] sm:$0xff]   ;;  %v2807_v19 = vld [vmem:[#allocation4 + $0xa0] sm:$0xff]   ;;  %v2810_v22 = vld [vmem:[#allocation4 + $0x28] sm:$0xff]  }
  0x2e   :  { %2595 = vmatpush3.bf16.msra.mxu1 %v2795_v7  ;;  %2562 = vmatprep.subr.bf16.mxu0 %v2796_v8  ;;  %v2811_v23 = vld [vmem:[#allocation4 + $0xa8] sm:$0xff]   ;;  %v2812_v24 = vld [vmem:[#allocation4 + $0x70] sm:$0xff]   ;;  %v2816_v28 = vld [vmem:[#allocation4 + $0x78] sm:$0xff]  }
  0x2f   :  { %2596 = vmatprep.subr.bf16.mxu1 %v2797_v9  ;;  %v2813_v25 = vld [vmem:[#allocation4 + $0xf0] sm:$0xff]   ;;  %v2817_v29 = vld [vmem:[#allocation4 + $0xf8] sm:$0xff]   ;;  %v2825_v35 = vld [vmem:[%s3523_s0 + $0x10] ss:$8 sps:$4 sm:$0xff]  }
  0x30   :  { %v2814_v26 = vld [vmem:[#allocation4 + $0x30] sm:$0xff]   ;;  %v2818_v30 = vld [vmem:[#allocation4 + $0x38] sm:$0xff]   ;;  %v2832_v41 = vld [vmem:[%s3526_s3 + $0x10] ss:$8 sps:$4 sm:$0xff]  }
  0x31   :  { %2563 = vmatpush3.bf16.msra.mxu0 %v2798_v10  ;;  %v2815_v27 = vld [vmem:[#allocation4 + $0xb0] sm:$0xff]   ;;  %v2819_v31 = vld [vmem:[#allocation4 + $0xb8] sm:$0xff]   ;;  %v2838_v45 = vld [vmem:[%s3526_s3 + $0x30] ss:$8 sps:$4 sm:$0xff]  }
  0x32   :  { %2597 = vmatpush3.bf16.msra.mxu1 %v2799_v11  ;;  %2564 = vmatprep.subr.bf16.mxu0 %v2800_v12  ;;  %v2820_v32 = vld [vmem:[%s3523_s0] ss:$8 sps:$4 sm:$0xff]   ;;  %v2822_v33 = vld [vmem:[%s3523_s0 + $0x4] ss:$8 sps:$4 sm:$0xff]   ;;  %v2823_v34 = vld [vmem:[%s3523_s0 + $0x14] ss:$8 sps:$4 sm:$0xff]  }
  0x33   :  { %2598 = vmatprep.subr.bf16.mxu1 %v2801_v13  ;;  %258 = vmatprep.mubr.bf16.mxu0 %v2822_v33  ;;  %v2826_v36 = vld [vmem:[%s3523_s0 + $0x24] ss:$8 sps:$4 sm:$0xff]   ;;  %v2828_v37 = vld [vmem:[%s3523_s0 + $0x20] ss:$8 sps:$4 sm:$0xff]   ;;  %v2834_v40 = vld [vmem:[%s3526_s3 + $0x14] ss:$8 sps:$4 sm:$0xff]  }
  0x34   :  { %444 = vmatprep.mubr.bf16.mxu1 %v2822_v33  ;;  %v2829_v38 = vld [vmem:[%s3526_s3] ss:$8 sps:$4 sm:$0xff]   ;;  %v2831_v39 = vld [vmem:[%s3526_s3 + $0x4] ss:$8 sps:$4 sm:$0xff]   ;;  %v2840_v44 = vld [vmem:[%s3526_s3 + $0x34] ss:$8 sps:$4 sm:$0xff]  }
  0x35   :  { %2565 = vmatpush3.bf16.msra.mxu0 %v2802_v14  ;;  %v2837_v42 = vld [vmem:[%s3526_s3 + $0x24] ss:$8 sps:$4 sm:$0xff]   ;;  %v2835_v43 = vld [vmem:[%s3526_s3 + $0x20] ss:$8 sps:$4 sm:$0xff]   ;;  %v2846_v48 = vld [vmem:[%s3526_s3 + $0x54] ss:$8 sps:$4 sm:$0xff]  }
  0x36   :  { %2599 = vmatpush3.bf16.msra.mxu1 %v2803_v15  ;;  %2566 = vmatprep.subr.bf16.mxu0 %v2804_v16  ;;  %v2843_v46 = vld [vmem:[%s3526_s3 + $0x44] ss:$8 sps:$4 sm:$0xff]   ;;  %v2841_v47 = vld [vmem:[%s3526_s3 + $0x40] ss:$8 sps:$4 sm:$0xff]   ;;  %v2844_v49 = vld [vmem:[%s3526_s3 + $0x50] ss:$8 sps:$4 sm:$0xff]  }
  0x37   :  { %2600 = vmatprep.subr.bf16.mxu1 %v2805_v17  ;;  %v2849_v50 = vld [vmem:[%s3526_s3 + $0x64] ss:$8 sps:$4 sm:$0xff]   ;;  %v2847_v51 = vld [vmem:[%s3526_s3 + $0x60] ss:$8 sps:$4 sm:$0xff]   ;;  %v2850_v52 = vld [vmem:[%s3526_s3 + $0x70] ss:$8 sps:$4 sm:$0xff]  }
  0x38   :  { %v2852_v53 = vld [vmem:[%s3526_s3 + $0x74] ss:$8 sps:$4 sm:$0xff]   ;;  %v2855_v55 = vld [vmem:[%s3526_s3 + $0x84] ss:$8 sps:$4 sm:$0xff]   ;;  %s3109_s0 = smov [#allocation9]  }
  0x39   :  { %2567 = vmatpush3.bf16.msra.mxu0 %v2806_v18  ;;  %s2272_s12 = sshll.u32 %s3109_s0, 4  ;;  %s2273_s12 = int_to_ptr.vmem [resolvable:$true] %s2272_s12 }
  0x3a   :  { %2601 = vmatpush3.bf16.msra.mxu1 %v2807_v19  ;;  %2568 = vmatprep.subr.bf16.mxu0 %v2808_v20  ;;  %p3078_p3 = scmp.lt.s32.totalorder %s2273_s12, %s2273_s12 }
  0x3b   :  { %2602 = vmatprep.subr.bf16.mxu1 %v2809_v21 }
  0x3d   :  { %2569 = vmatpush3.bf16.msra.mxu0 %v2810_v22 }
  0x3e   :  { %2603 = vmatpush3.bf16.msra.mxu1 %v2811_v23  ;;  %2570 = vmatprep.subr.bf16.mxu0 %v2812_v24 }
  0x3f   :  { %2604 = vmatprep.subr.bf16.mxu1 %v2813_v25 }
  0x41   :  { %2571 = vmatpush3.bf16.msra.mxu0 %v2814_v26 }
  0x42   :  { %2605 = vmatpush3.bf16.msra.mxu1 %v2815_v27  ;;  %2572 = vmatprep.subr.bf16.mxu0 %v2816_v28  ;;  %v2320_v27 = vld [vmem:[%s3525_s2] ss:$0 sm:$0xff] }
  0x43   :  { %2606 = vmatprep.subr.bf16.mxu1 %v2817_v29 }
  0x45   :  { %2573 = vmatpush3.bf16.msra.mxu0 %v2818_v30 }
  0x46   :  { %2607 = vmatpush3.bf16.msra.mxu1 %v2819_v31  ;;  %611 = vmatprep.subr.bf16.mxu0 %v2831_v39 }
  0x48   :  { %259 = vmatmul.mubr.bf16.vlgmr.msra.gmra.mrb[0].mxu0 %v2820_v32 }
  0x49   :  { %445 = vmatmul.mubr.bf16.vlgmr.msra.gmra.mrb[0].mxu1 %v2820_v32  ;;  %266 = vmatprep.mubr.bf16.mxu0 %v2823_v34 }
  0x4a   :  { %452 = vmatprep.mubr.bf16.mxu1 %v2823_v34  ;;  %612 = vmatpush1.bf16.msra.mxu0 %v2829_v38 }
  0x4b   :  { %613 = vmatprep.subr.bf16.mxu0 %v2834_v40 }
  0x4e   :  { %614 = vmatpush1.bf16.msra.mxu0 %v2832_v41 }
  0x4f   :  { %615 = vmatprep.subr.bf16.mxu0 %v2837_v42 }
  0x50   :  { %267 = vmatmul.mubr.bf16.gmra.mrb[4].mxu0 %v2825_v35 }
  0x51   :  { %453 = vmatmul.mubr.bf16.gmra.mrb[4].mxu1 %v2825_v35  ;;  %274 = vmatprep.mubr.bf16.mxu0 %v2826_v36 }
  0x52   :  { %460 = vmatprep.mubr.bf16.mxu1 %v2826_v36  ;;  %616 = vmatpush1.bf16.msra.mxu0 %v2835_v43 }
  0x53   :  { %617 = vmatprep.subr.bf16.mxu0 %v2840_v44 }
  0x56   :  { %618 = vmatpush1.bf16.msra.mxu0 %v2838_v45 }
  0x57   :  { %619 = vmatprep.subr.bf16.mxu0 %v2843_v46  ;;  %v2853_v46 = vld [vmem:[%s3526_s3 + $0x80] ss:$8 sps:$4 sm:$0xff]  }
  0x58   :  { %275 = vmatmul.mubr.bf16.gmra.mrb[8].mxu0 %v2828_v37 }
  0x59   :  { %461 = vmatmul.mubr.bf16.gmra.mrb[8].mxu1 %v2828_v37  ;;  %643 = vmatprep.mubr.bf16.mxu0 %v3105_v54 }
  0x5a   :  { %620 = vmatpush1.bf16.msra.mxu0 %v2841_v47  ;;  %v2859_v47 = vld [vmem:[%s3526_s3 + $0x94] ss:$8 sps:$4 sm:$0xff]  }
  0x5b   :  { %621 = vmatprep.subr.bf16.mxu0 %v2846_v48 }
  0x5e   :  { %622 = vmatpush1.bf16.msra.mxu0 %v2844_v49  ;;  %v2857_v49 = vld [vmem:[%s3526_s3 + $0x90] ss:$8 sps:$4 sm:$0xff]  }
  0x5f   :  { %623 = vmatprep.subr.bf16.mxu0 %v2849_v50  ;;  %v2862_v50 = vld [vmem:[%s3526_s3 + $0xa4] ss:$8 sps:$4 sm:$0xff]  }
  0x62   :  { %624 = vmatpush1.bf16.msra.mxu0 %v2847_v51  ;;  %v2860_v51 = vld [vmem:[%s3526_s3 + $0xa0] ss:$8 sps:$4 sm:$0xff]  }
  0x63   :  { %625 = vmatprep.subr.bf16.mxu0 %v2852_v53  ;;  %v2863_v53 = vld [vmem:[%s3526_s3 + $0xb0] ss:$8 sps:$4 sm:$0xff]  }
  0x66   :  { %626 = vmatpush1.bf16.msra.mxu0 %v2850_v52  ;;  %v2865_v52 = vld [vmem:[%s3526_s3 + $0xb4] ss:$8 sps:$4 sm:$0xff]  }
  0x67   :  { %771 = vmatprep.subr.bf16.mxu0 %v2855_v55  ;;  %v2868_v55 = vld [vmem:[%s3526_s3 + $0xc4] ss:$8 sps:$4 sm:$0xff]  }
 0x11b   :  { %v2574_v56 = vpop.f32.mrb[0].mxu0 }
 0x11c   :  { %v2608_v57 = vpop.f32.mrb[0].mxu1  ;;  %v2575_v58 = vpop.f32.mrb[1].mxu0 }
 0x11d   :  { %v2609_v59 = vpop.f32.mrb[1].mxu1  ;;  %v2576_v60 = vadd.f32 %v2575_v58, %v2574_v56  ;;  %v2577_v62 = vpop.f32.mrb[2].mxu0  ;;  %v2866_v56 = vld [vmem:[%s3526_s3 + $0xc0] ss:$8 sps:$4 sm:$0xff]   ;;  %v2869_v58 = vld [vmem:[%s3526_s3 + $0xd0] ss:$8 sps:$4 sm:$0xff]  }
 0x11e   :  { %v2610_v61 = vadd.f32 %v2609_v59, %v2608_v57  ;;  %v2611_v63 = vpop.f32.mrb[2].mxu1  ;;  %v2578_v0 = vpop.f32.mrb[3].mxu0  ;;  %v2871_v57 = vld [vmem:[%s3526_s3 + $0xd4] ss:$8 sps:$4 sm:$0xff]   ;;  %v2874_v59 = vld [vmem:[%s3526_s3 + $0xe4] ss:$8 sps:$4 sm:$0xff]  }
 0x11f   :  { %v2612_v1 = vpop.f32.mrb[3].mxu1  ;;  %v2579_v2 = vadd.f32 %v2578_v0, %v2577_v62 }
 0x120   :  { %v2613_v3 = vadd.f32 %v2612_v1, %v2611_v63  ;;  %v2875_v63 = vld [vmem:[%s3526_s3 + $0xf0] ss:$8 sps:$4 sm:$0xff]   ;;  %v2882_v1 = vld [vmem:[%s3526_s3 + $0x104] ss:$8 sps:$4 sm:$0xff]  }
 0x123   :  { %v2580_v4 = vpop.f32.mrb[4].mxu0 }
 0x124   :  { %v2614_v5 = vpop.f32.mrb[4].mxu1  ;;  %v2581_v6 = vpop.f32.mrb[5].mxu0 }
 0x125   :  { %v2615_v7 = vpop.f32.mrb[5].mxu1  ;;  %v2582_v8 = vadd.f32 %v2581_v6, %v2580_v4  ;;  %v2583_v10 = vpop.f32.mrb[6].mxu0  ;;  %v2880_v4 = vld [vmem:[%s3526_s3 + $0x100] ss:$8 sps:$4 sm:$0xff]  }
 0x126   :  { %v2616_v9 = vadd.f32 %v2615_v7, %v2614_v5  ;;  %v2617_v11 = vpop.f32.mrb[6].mxu1  ;;  %v2584_v12 = vpop.f32.mrb[7].mxu0  ;;  %v2885_v5 = vld [vmem:[%s3526_s3 + $0x114] ss:$8 sps:$4 sm:$0xff]   ;;  %v2883_v7 = vld [vmem:[%s3526_s3 + $0x110] ss:$8 sps:$4 sm:$0xff]  }
 0x127   :  { %v2618_v13 = vpop.f32.mrb[7].mxu1  ;;  %v2585_v14 = vadd.f32 %v2584_v12, %v2583_v10  ;;  %v2891_v10 = vld [vmem:[%s3526_s3 + $0x134] ss:$8 sps:$4 sm:$0xff]   ;;  %v2894_v12 = vld [vmem:[%s3526_s3 + $0x144] ss:$8 sps:$4 sm:$0xff]  }
 0x128   :  { %v2619_v15 = vadd.f32 %v2618_v13, %v2617_v11  ;;  %v2889_v11 = vld [vmem:[%s3526_s3 + $0x130] ss:$8 sps:$4 sm:$0xff]   ;;  %v2892_v13 = vld [vmem:[%s3526_s3 + $0x140] ss:$8 sps:$4 sm:$0xff]  }
 0x129   :  { %v469_v16 = vmax.f32 %v2576_v60, %v2585_v14  ;;  %v2872_v60 = vld [vmem:[%s3526_s3 + $0xe0] ss:$8 sps:$4 sm:$0xff]   ;;  %v2897_v14 = vld [vmem:[%s3526_s3 + $0x154] ss:$8 sps:$4 sm:$0xff]  }
 0x12a   :  { %v472_v17 = vmax.f32 %v2610_v61, %v2619_v15  ;;  %v2877_v61 = vld [vmem:[%s3526_s3 + $0xf4] ss:$8 sps:$4 sm:$0xff]   ;;  %v2895_v15 = vld [vmem:[%s3526_s3 + $0x150] ss:$8 sps:$4 sm:$0xff]  }
 0x12b   :  { %v2586_v19 = vpop.f32.mrb[8].mxu0 }
 0x12c   :  { %v475_v18 = vmax.f32 %v469_v16, %v472_v17  ;;  %v2620_v20 = vpop.f32.mrb[8].mxu1  ;;  %v2587_v21 = vpop.f32.mrb[9].mxu0  ;;  %v2900_v16 = vld [vmem:[%s3526_s3 + $0x164] ss:$8 sps:$4 sm:$0xff]   ;;  %v2898_v17 = vld [vmem:[%s3526_s3 + $0x160] ss:$8 sps:$4 sm:$0xff]  }
 0x12d   :  { %v2621_v22 = vpop.f32.mrb[9].mxu1  ;;  %v2588_v23 = vadd.f32 %v2587_v21, %v2586_v19  ;;  %v2589_v25 = vpop.f32.mrb[10].mxu0 }
 0x12e   :  { %v2622_v24 = vadd.f32 %v2621_v22, %v2620_v20  ;;  %v2623_v26 = vpop.f32.mrb[10].mxu1  ;;  %v2590_v28 = vpop.f32.mrb[11].mxu0  ;;  %v485_v34 = vadd.f32 %v2320_v27, %v475_v18  ;;  %v2903_v18 = vld [vmem:[%s3526_s3 + $0x174] ss:$8 sps:$4 sm:$0xff]   ;;  %v2901_v20 = vld [vmem:[%s3526_s3 + $0x170] ss:$8 sps:$4 sm:$0xff]  }
 0x12f   :  { %v2624_v29 = vpop.f32.mrb[11].mxu1  ;;  %v470_v30 = vmax.f32 %v2579_v2, %v2588_v23  ;;  %v2591_v32 = vadd.f32 %v2590_v28, %v2589_v25  ;;  %v2908_v22 = vld [vmem:[%s3526_s3 + $0x184] ss:$8 sps:$4 sm:$0xff]   ;;  %v2906_v25 = vld [vmem:[%s3526_s3 + $0x180] ss:$8 sps:$4 sm:$0xff]  }
 0x130   :  { %v473_v31 = vmax.f32 %v2613_v3, %v2622_v24  ;;  %v2625_v33 = vadd.f32 %v2624_v29, %v2623_v26  ;;  %v488_v40 = vmax.f32 %v485_v34, 0.0  ;;  %v2911_v26 = vld [vmem:[%s3526_s3 + $0x194] ss:$8 sps:$4 sm:$0xff]   ;;  %v2909_v28 = vld [vmem:[%s3526_s3 + $0x190] ss:$8 sps:$4 sm:$0xff]  }
 0x131   :  { %v471_v36 = vmax.f32 %v2582_v8, %v2591_v32  ;;  %v2888_v8 = vld [vmem:[%s3526_s3 + $0x124] ss:$8 sps:$4 sm:$0xff]   ;;  %v2915_v32 = vld [vmem:[%s3526_s3 + $0x1b0] ss:$8 sps:$4 sm:$0xff]   ;;  %v2918_v34 = vld [vmem:[%s3526_s3 + $0x1c0] ss:$8 sps:$4 sm:$0xff]  }
 0x132   :  { %v476_v35 = vmax.f32 %v470_v30, %v473_v31  ;;  %v474_v37 = vmax.f32 %v2616_v9, %v2625_v33  ;;  %v2886_v9 = vld [vmem:[%s3526_s3 + $0x120] ss:$8 sps:$4 sm:$0xff]   ;;  %v2914_v29 = vld [vmem:[%s3526_s3 + $0x1a4] ss:$8 sps:$4 sm:$0xff]   ;;  %v2917_v31 = vld [vmem:[%s3526_s3 + $0x1b4] ss:$8 sps:$4 sm:$0xff]  }
 0x133   :  { %v2912_v30 = vld [vmem:[%s3526_s3 + $0x1a0] ss:$8 sps:$4 sm:$0xff]   ;;  %v2920_v33 = vld [vmem:[%s3526_s3 + $0x1c4] ss:$8 sps:$4 sm:$0xff]  }
 0x134   :  { %v486_v38 = vadd.f32 %v2320_v27, %v476_v35  ;;  %v477_v39 = vmax.f32 %v471_v36, %v474_v37  ;;  %v2923_v35 = vld [vmem:[%s3526_s3 + $0x1d4] ss:$8 sps:$4 sm:$0xff]   ;;  %v2921_v36 = vld [vmem:[%s3526_s3 + $0x1d0] ss:$8 sps:$4 sm:$0xff]   ;;  %v2926_v37 = vld [vmem:[%s3526_s3 + $0x1e4] ss:$8 sps:$4 sm:$0xff]  }
 0x136   :  { %v489_v41 = vmax.f32 %v486_v38, 0.0  ;;  %v487_v42 = vadd.f32 %v2320_v27, %v477_v39  ;;  %v2924_v38 = vld [vmem:[%s3526_s3 + $0x1e0] ss:$8 sps:$4 sm:$0xff]   ;;  %v2929_v39 = vld [vmem:[%s3526_s3 + $0x1f4] ss:$8 sps:$4 sm:$0xff]  }
 0x138   :  { %v2556_v43 = vpack.c.bf16 %v489_v41, %v488_v40  ;;  %v490_v44 = vmax.f32 %v487_v42, 0.0  ;;  %v2927_v41 = vld [vmem:[%s3526_s3 + $0x1f0] ss:$8 sps:$4 sm:$0xff]  }
 0x13a   :  { %2557 = vst [vmem:[#allocation2] sm:$0xff] %v2556_v43   ;;  %v2552_v45 = vpack.c.bf16 %v490_v44, %v490_v44  ;;  %v2934_v43 = vld [vmem:[%s3526_s3 + $0x204] ss:$8 sps:$4 sm:$0xff]  }
 0x13c   :  { %506 = vst [vmem:[#allocation2 + $0x8] sm:$0xf] %v2552_v45 }
 0x141   :  { %v2856_v48 = vld [vmem:[#allocation2] sm:$0xff]  }
 0x142   :  { %644 = vmatmul.mubr.bf16.vlgmr.msra.gmra.mrb[12].mxu0 %v2856_v48  ;;  %v2878_v0 = vld [vmem:[#allocation2] sm:$0xfe]  }
 0x143   :  { %772 = vmatpush1.bf16.msra.mxu0 %v2853_v46  ;;  %803 = vmatprep.mubr.bf16.mxu0 %v3105_v54  ;;  %v2879_v62 = vld [vmem:[#allocation2 + $0x8] ss:$0 sps:$4 sm:$0x11]   ;;  %v687_v3 = vrot.slane %v2878_v0, 1  ;;  %v2904_v21 = vld [vmem:[#allocation2] sm:$0xfc]  }
 0x144   :  { %773 = vmatprep.subr.bf16.mxu0 %v2859_v47  ;;  %v688_v2 = vrot.slane %v2879_v62, 1  ;;  %v2905_v19 = vld [vmem:[#allocation2 + $0x8] ss:$0 sps:$4 sm:$0x33]   ;;  %v855_v24 = vrot.slane %v2904_v21, 2  ;;  %v2958_v0 = vld [vmem:[#allocation7 + $0x80] sm:$0xff]  }
 0x145   :  { %v856_v23 = vrot.slane %v2905_v19, 2  ;;  %v2931_v40 = vld [vmem:[#allocation2 + $0x8] ss:$0 sps:$4 sm:$0x77]   ;;  %v2930_v42 = vld [vmem:[#allocation2] sm:$0xf8]  }
 0x146   :  { %v689_v6 = vsel %vm686_vm0, %v687_v3, %v688_v2  ;;  %v1024_v44 = vrot.slane %v2931_v40, 3  ;;  %v1023_v45 = vrot.slane %v2930_v42, 3  ;;  %v2932_v46 = vld [vmem:[%s3526_s3 + $0x200] ss:$8 sps:$4 sm:$0xff]   ;;  %v2937_v47 = vld [vmem:[%s3526_s3 + $0x214] ss:$8 sps:$4 sm:$0xff]  }
 0x147   :  { %774 = vmatpush1.bf16.msra.mxu0 %v2857_v49  ;;  %v857_v27 = vsel %vm854_vm1, %v855_v24, %v856_v23  ;;  %v2935_v49 = vld [vmem:[%s3526_s3 + $0x210] ss:$8 sps:$4 sm:$0xff]   ;;  %v2956_v62 = vld [vmem:[#allocation2 + $0x4] sm:$0xff]   ;;  %v2961_v3 = vld [vmem:[#allocation7 + $0xd0] sm:$0xff]  }
 0x148   :  { %775 = vmatprep.subr.bf16.mxu0 %v2862_v50  ;;  %v1025_v48 = vsel %vm1022_vm2, %v1023_v45, %v1024_v44  ;;  %v2940_v50 = vld [vmem:[%s3526_s3 + $0x224] ss:$8 sps:$4 sm:$0xff]   ;;  %v2960_v2 = vld [vmem:[#allocation7 + $0x88] sm:$0xff]   ;;  %v2970_v42 = vld [vmem:[#allocation7 + $0xb0] sm:$0xff]  }
 0x149   :  { %v2968_v23 = vld [vmem:[#allocation7 + $0xa8] sm:$0xff]  }
 0x14b   :  { %776 = vmatpush1.bf16.msra.mxu0 %v2860_v51  ;;  %v2938_v51 = vld [vmem:[%s3526_s3 + $0x220] ss:$8 sps:$4 sm:$0xff]  }
 0x14c   :  { %777 = vmatprep.subr.bf16.mxu0 %v2865_v52  ;;  %v2943_v52 = vld [vmem:[%s3526_s3 + $0x234] ss:$8 sps:$4 sm:$0xff]  }
 0x14f   :  { %778 = vmatpush1.bf16.msra.mxu0 %v2863_v53  ;;  %v2946_v53 = vld [vmem:[%s3526_s3 + $0x244] ss:$8 sps:$4 sm:$0xff]  }
 0x150   :  { %779 = vmatprep.subr.bf16.mxu0 %v2868_v55  ;;  %v2944_v55 = vld [vmem:[%s3526_s3 + $0x240] ss:$8 sps:$4 sm:$0xff]  }
 0x153   :  { %780 = vmatpush1.bf16.msra.mxu0 %v2866_v56  ;;  %v2949_v56 = vld [vmem:[%s3526_s3 + $0x254] ss:$8 sps:$4 sm:$0xff]  }
 0x154   :  { %781 = vmatprep.subr.bf16.mxu0 %v2871_v57  ;;  %v2947_v57 = vld [vmem:[%s3526_s3 + $0x250] ss:$8 sps:$4 sm:$0xff]  }
 0x157   :  { %782 = vmatpush1.bf16.msra.mxu0 %v2869_v58  ;;  %v2952_v58 = vld [vmem:[%s3526_s3 + $0x264] ss:$8 sps:$4 sm:$0xff]  }
 0x158   :  { %783 = vmatprep.subr.bf16.mxu0 %v2874_v59  ;;  %v2950_v59 = vld [vmem:[%s3526_s3 + $0x260] ss:$8 sps:$4 sm:$0xff]  }
 0x15b   :  { %784 = vmatpush1.bf16.msra.mxu0 %v2872_v60  ;;  %v2955_v60 = vld [vmem:[%s3526_s3 + $0x274] ss:$8 sps:$4 sm:$0xff]  }
 0x15c   :  { %785 = vmatprep.subr.bf16.mxu0 %v2877_v61  ;;  %v2953_v61 = vld [vmem:[%s3526_s3 + $0x270] ss:$8 sps:$4 sm:$0xff]  }
 0x15f   :  { %786 = vmatpush1.bf16.msra.mxu0 %v2875_v63  ;;  %v2957_v63 = vld [vmem:[#allocation7 + $0xc0] sm:$0xff]  }
 0x160   :  { %939 = vmatprep.subr.bf16.mxu0 %v2882_v1  ;;  %v2959_v1 = vld [vmem:[#allocation7 + $0xc8] sm:$0xff]   ;;  %2626 = vmatprep.subr.bf16.mxu1 %v2957_v63 }
 0x161   :  { %2627 = vmatpush3.bf16.msra.mxu1 %v2958_v0 }
 0x162   :  { %804 = vmatmul.mubr.bf16.vlgmr.msra.gmra.mrb[12].mxu0 %v689_v6  ;;  %2628 = vmatprep.subr.bf16.mxu1 %v2959_v1  ;;  %v2964_v6 = vld [vmem:[#allocation7 + $0x98] sm:$0xff]  }
 0x163   :  { %940 = vmatpush1.bf16.msra.mxu0 %v2880_v4  ;;  %971 = vmatprep.mubr.bf16.mxu0 %v3105_v54  ;;  %v2962_v4 = vld [vmem:[#allocation7 + $0x90] sm:$0xff]  }
 0x164   :  { %941 = vmatprep.subr.bf16.mxu0 %v2885_v5  ;;  %v2963_v5 = vld [vmem:[#allocation7 + $0xd8] sm:$0xff]  }
 0x165   :  { %2629 = vmatpush3.bf16.msra.mxu1 %v2960_v2  ;;  %v2973_v2 = vld [vmem:[#allocation7 + $0x40] sm:$0xff]  }
 0x166   :  { %2630 = vmatprep.subr.bf16.mxu1 %v2961_v3 }
 0x167   :  { %942 = vmatpush1.bf16.msra.mxu0 %v2883_v7  ;;  %v2965_v7 = vld [vmem:[#allocation7 + $0xe0] sm:$0xff]  }
 0x168   :  { %943 = vmatprep.subr.bf16.mxu0 %v2888_v8  ;;  %v2966_v8 = vld [vmem:[#allocation7 + $0xa0] sm:$0xff]  }
 0x169   :  { %2631 = vmatpush3.bf16.msra.mxu1 %v2962_v4 }
 0x16a   :  { %2632 = vmatprep.subr.bf16.mxu1 %v2963_v5 }
 0x16b   :  { %944 = vmatpush1.bf16.msra.mxu0 %v2886_v9  ;;  %v2967_v9 = vld [vmem:[#allocation7 + $0xe8] sm:$0xff]  }
 0x16c   :  { %945 = vmatprep.subr.bf16.mxu0 %v2891_v10  ;;  %v1336_v10 = vlaneseq }
 0x16d   :  { %2633 = vmatpush3.bf16.msra.mxu1 %v2964_v6 }
 0x16e   :  { %2634 = vmatprep.subr.bf16.mxu1 %v2965_v7 }
 0x16f   :  { %946 = vmatpush1.bf16.msra.mxu0 %v2889_v11 }
 0x170   :  { %947 = vmatprep.subr.bf16.mxu0 %v2894_v12 }
 0x171   :  { %2635 = vmatpush3.bf16.msra.mxu1 %v2966_v8 }
 0x172   :  { %2636 = vmatprep.subr.bf16.mxu1 %v2967_v9 }
 0x173   :  { %948 = vmatpush1.bf16.msra.mxu0 %v2892_v13  ;;  %v1337_v13 = vshrl.u32 %v1336_v10, 7 }
 0x174   :  { %949 = vmatprep.subr.bf16.mxu0 %v2897_v14 }
 0x175   :  { %2637 = vmatpush3.bf16.msra.mxu1 %v2968_v23 }
 0x177   :  { %950 = vmatpush1.bf16.msra.mxu0 %v2895_v15 }
 0x178   :  { %951 = vmatprep.subr.bf16.mxu0 %v2900_v16  ;;  %v1338_v16 = vsub.s32 0, %v1337_v13 }
 0x17b   :  { %952 = vmatpush1.bf16.msra.mxu0 %v2898_v17  ;;  %v1334_v17 = vld [vmem:[%s3527_s4] sm:$0x3]  ;;  %s3106_s4 = smov 108  }
 0x17c   :  { %953 = vmatprep.subr.bf16.mxu0 %v2903_v18  ;;  %v1342_v18 = vsub.s32 1, %v1337_v13 }
 0x17e   :  { %v1343_v24 = vrot.slane %v1334_v17, %v1342_v18 }
 0x17f   :  { %954 = vmatpush1.bf16.msra.mxu0 %v2901_v20  ;;  %v1339_v20 = vrot.slane %v1334_v17, %v1338_v16 }
 0x180   :  { %1107 = vmatprep.subr.bf16.mxu0 %v2908_v22 }
 0x182   :  { %972 = vmatmul.mubr.bf16.vlgmr.msra.gmra.mrb[12].mxu0 %v857_v27 }
 0x183   :  { %1108 = vmatpush1.bf16.msra.mxu0 %v2906_v25  ;;  %1139 = vmatprep.mubr.bf16.mxu0 %v3105_v54 }
 0x184   :  { %1109 = vmatprep.subr.bf16.mxu0 %v2911_v26 }
 0x187   :  { %1110 = vmatpush1.bf16.msra.mxu0 %v2909_v28 }
 0x188   :  { %1111 = vmatprep.subr.bf16.mxu0 %v2914_v29 }
 0x18b   :  { %1112 = vmatpush1.bf16.msra.mxu0 %v2912_v30 }
 0x18c   :  { %1113 = vmatprep.subr.bf16.mxu0 %v2917_v31 }
 0x18f   :  { %1114 = vmatpush1.bf16.msra.mxu0 %v2915_v32 }
 0x190   :  { %1115 = vmatprep.subr.bf16.mxu0 %v2920_v33 }
 0x193   :  { %1116 = vmatpush1.bf16.msra.mxu0 %v2918_v34 }
 0x194   :  { %1117 = vmatprep.subr.bf16.mxu0 %v2923_v35 }
 0x197   :  { %1118 = vmatpush1.bf16.msra.mxu0 %v2921_v36  ;;  %v2969_v36 = vld [vmem:[#allocation7 + $0xf0] sm:$0xff]  }
 0x198   :  { %1119 = vmatprep.subr.bf16.mxu0 %v2926_v37  ;;  %2638 = vmatprep.subr.bf16.mxu1 %v2969_v36  ;;  %v2983_v36 = vld [vmem:[#allocation7 + $0x68] sm:$0xff]  }
 0x199   :  { %2639 = vmatpush3.bf16.msra.mxu1 %v2970_v42 }
 0x19b   :  { %1120 = vmatpush1.bf16.msra.mxu0 %v2924_v38 }
 0x19c   :  { %1121 = vmatprep.subr.bf16.mxu0 %v2929_v39 }
 0x19f   :  { %1122 = vmatpush1.bf16.msra.mxu0 %v2927_v41 }
 0x1a0   :  { %1267 = vmatprep.subr.bf16.mxu0 %v2934_v43 }
 0x1a2   :  { %1140 = vmatmul.mubr.bf16.vlgmr.msra.gmra.mrb[12].mxu0 %v1025_v48 }
 0x1a3   :  { %1268 = vmatpush1.bf16.msra.mxu0 %v2932_v46  ;;  %1299 = vmatprep.mubr.bf16.mxu0 %v3105_v54  ;;  %v2941_v54 = vld [vmem:[%s3526_s3 + $0x230] ss:$8 sps:$4 sm:$0xff]  }
 0x1a4   :  { %1269 = vmatprep.subr.bf16.mxu0 %v2937_v47 }
 0x1a7   :  { %1270 = vmatpush1.bf16.msra.mxu0 %v2935_v49 }
 0x1a8   :  { %1271 = vmatprep.subr.bf16.mxu0 %v2940_v50 }
 0x1ab   :  { %1272 = vmatpush1.bf16.msra.mxu0 %v2938_v51 }
 0x1ac   :  { %1273 = vmatprep.subr.bf16.mxu0 %v2943_v52 }
 0x1af   :  { %1274 = vmatpush1.bf16.msra.mxu0 %v2941_v54 }
 0x1b0   :  { %1275 = vmatprep.subr.bf16.mxu0 %v2946_v53 }
 0x1b3   :  { %1276 = vmatpush1.bf16.msra.mxu0 %v2944_v55 }
 0x1b4   :  { %1277 = vmatprep.subr.bf16.mxu0 %v2949_v56 }
 0x1b7   :  { %1278 = vmatpush1.bf16.msra.mxu0 %v2947_v57 }
 0x1b8   :  { %1279 = vmatprep.subr.bf16.mxu0 %v2952_v58  ;;  %v2971_v58 = vld [vmem:[#allocation7 + $0xf8] sm:$0xff]  }
 0x1b9   :  { %2640 = vmatprep.subr.bf16.mxu1 %v2971_v58  ;;  %v2993_v58 = vld [vmem:[#allocation7 + $0x150] sm:$0xff]  }
 0x1bb   :  { %1280 = vmatpush1.bf16.msra.mxu0 %v2950_v59 }
 0x1bc   :  { %1281 = vmatprep.subr.bf16.mxu0 %v2955_v60 }
 0x1bf   :  { %1282 = vmatpush1.bf16.msra.mxu0 %v2953_v61 }
 0x1c2   :  { %1300 = vmatmul.mubr.bf16.vlgmr.msra.gmra.mrb[12].mxu0 %v2956_v62  ;;  %v2972_v62 = vld [vmem:[#allocation7 + $0xb8] sm:$0xff]  }
 0x1c3   :  { %2641 = vmatpush3.bf16.msra.mxu1 %v2972_v62  ;;  %v2997_v62 = vld [vmem:[#allocation7 + $0x160] sm:$0xff]  }
 0x1c4   :  { %2648 = vmatprep.subr.bf16.mxu1 %v2973_v2 }
 0x295   :  { %v1301_v11 = vpop.f32.mrb[12].mxu0 }
 0x296   :  { %1318 = vst [vmem:[#allocation3] sm:$0xff] %v1301_v11  ;;  %v1303_v12 = vpop.f32.mrb[13].mxu0 }
 0x297   :  { %1319 = vst [vmem:[#allocation3 + $0x8] sm:$0xff] %v1303_v12  ;;  %v1305_v14 = vpop.f32.mrb[14].mxu0 }
 0x298   :  { %1320 = vst [vmem:[#allocation3 + $0x10] sm:$0xff] %v1305_v14  ;;  %v1307_v15 = vpop.f32.mrb[15].mxu0 }
 0x299   :  { %1321 = vst [vmem:[#allocation3 + $0x18] sm:$0xff] %v1307_v15 }
 0x29d   :  { %v1399_v19 = vld [vmem:[#allocation3] sm:$0xc0]  ;;  %v1397_v25 = vld [vmem:[#allocation3] sm:$0x30]  ;;  %v1324_v35 = vld [vmem:[#allocation3] sm:$0xc] }
 0x29e   :  { %v1400_v21 = vld [vmem:[#allocation3 + $0x8] sm:$0xc0]  ;;  %v1403_v22 = vrot.slane %v1399_v19, 2  ;;  %v1398_v28 = vld [vmem:[#allocation3 + $0x8] sm:$0x30]  ;;  %v1328_v41 = vrot.slane %v1324_v35, 2 }
 0x29f   :  { %v1404_v26 = vrot.slane %v1400_v21, 2  ;;  %v1740_v27 = vld [vmem:[#allocation3 + $0x10] sm:$0xc]  ;;  %v1738_v33 = vld [vmem:[#allocation3 + $0x10] sm:$0x3]  ;;  %v2982_v35 = vld [vmem:[#allocation7 + $0x20] sm:$0xff]  }
 0x2a0   :  { %v1407_v29 = vmax.f32 %v1397_v25, %v1403_v22  ;;  %v1741_v30 = vld [vmem:[#allocation3 + $0x18] sm:$0xc]  ;;  %v1744_v31 = vrot.slane %v1740_v27, 2  ;;  %v1739_v38 = vld [vmem:[#allocation3 + $0x18] sm:$0x3]  ;;  %v2974_v25 = vld [vmem:[#allocation7] sm:$0xff]  }
 0x2a1   :  { %v1408_v32 = vmax.f32 %v1398_v28, %v1404_v26  ;;  %v1745_v34 = vrot.slane %v1741_v30, 2  ;;  %v1325_v40 = vld [vmem:[#allocation3 + $0x8] sm:$0xc]  ;;  %v1322_v45 = vld [vmem:[#allocation3] sm:$0x3]  ;;  %v2978_v30 = vld [vmem:[#allocation7 + $0x10] sm:$0xff]  }
 0x2a2   :  { %v1409_v37 = vadd.f32 %v1407_v29, %v1339_v20  ;;  %v1748_v39 = vmax.f32 %v1738_v33, %v1744_v31  ;;  %v1329_v46 = vrot.slane %v1325_v40, 2  ;;  %v1940_v47 = vld [vmem:[#allocation3 + $0x10] sm:$0xc0]  ;;  %v1323_v49 = vld [vmem:[#allocation3 + $0x8] sm:$0x3]  ;;  %v1332_v50 = vmax.f32 %v1322_v45, %v1328_v41  ;;  %v2979_v31 = vld [vmem:[#allocation7 + $0x58] sm:$0xff]  }
 0x2a3   :  { %v1410_v43 = vadd.f32 %v1408_v32, %v1343_v24  ;;  %v1749_v44 = vmax.f32 %v1739_v38, %v1745_v34  ;;  %v1941_v51 = vld [vmem:[#allocation3 + $0x18] sm:$0xc0]  ;;  %v1944_v52 = vrot.slane %v1940_v47, 2  ;;  %v1938_v56 = vld [vmem:[#allocation3 + $0x10] sm:$0x30]  ;;  %v2975_v27 = vld [vmem:[#allocation7 + $0x48] sm:$0xff]  }
 0x2a4   :  { %v3453_v48 = vadd.f32 %v1748_v39, %v1339_v20  ;;  %v1333_v55 = vmax.f32 %v1323_v49, %v1329_v46  ;;  %v1945_v57 = vrot.slane %v1941_v51, 2  ;;  %v3457_v59 = vadd.f32 %v1339_v20, %v1332_v50  ;;  %v1939_v60 = vld [vmem:[#allocation3 + $0x18] sm:$0x30]  ;;  %v2976_v28 = vld [vmem:[#allocation7 + $0x8] sm:$0xff]   ;;  %v2977_v29 = vld [vmem:[#allocation7 + $0x50] sm:$0xff]  }
 0x2a5   :  { %v2768_v54 = vpack.i.bf16 %v1409_v37, %v1410_v43  ;;  %v3455_v53 = vadd.f32 %v1749_v44, %v1343_v24  ;;  %v1948_v61 = vmax.f32 %v1938_v56, %v1944_v52  ;;  %v2980_v32 = vld [vmem:[#allocation7 + $0x18] sm:$0xff]   ;;  %v2981_v33 = vld [vmem:[#allocation7 + $0x60] sm:$0xff]   ;;  %v2984_v39 = vld [vmem:[#allocation7 + $0x28] sm:$0xff]  }
 0x2a6   :  { %v1347_v0 = vadd.f32 %v1343_v24, %v1333_v55  ;;  %v1949_v1 = vmax.f32 %v1939_v60, %v1945_v57  ;;  %v2985_v40 = vld [vmem:[#allocation7 + $0x70] sm:$0xff]   ;;  %v2987_v45 = vld [vmem:[#allocation7 + $0x78] sm:$0xff]   ;;  %v2989_v50 = vld [vmem:[#allocation7 + $0x140] sm:$0xff]  }
 0x2a7   :  { %2769 = vrot.lane.b32.xlu0 %v2768_v54, %s3106_s4  ;;  %v2778_v63 = vpack.i.bf16 %v3453_v48, %v3455_v53  ;;  %v3461_v3 = vadd.f32 %v1948_v61, %v1339_v20  ;;  %v2988_v47 = vld [vmem:[#allocation7 + $0x38] sm:$0xff]   ;;  %v2990_v52 = vld [vmem:[#allocation7 + $0x100] sm:$0xff]   ;;  %v2991_v55 = vld [vmem:[#allocation7 + $0x148] sm:$0xff]  }
 0x2a8   :  { %v2773_v4 = vpack.i.bf16 %v3457_v59, %v1347_v0  ;;  %v3464_v5 = vadd.f32 %v1949_v1, %v1343_v24  ;;  %v2992_v57 = vld [vmem:[#allocation7 + $0x108] sm:$0xff]   ;;  %v2996_v61 = vld [vmem:[#allocation7 + $0x118] sm:$0xff]  }
 0x2a9   :  { %2779 = vrot.lane.b32.xlu1 %v2778_v63, %s3106_s4  ;;  %v2999_v1 = vld [vmem:[#allocation7 + $0x168] sm:$0xff]  }
 0x2aa   :  { %v2783_v6 = vpack.i.bf16 %v3461_v3, %v3464_v5 }
 0x2ab   :  { %2774 = vrot.lane.b32.xlu0 %v2773_v4, %s3106_s4 }
 0x2ad   :  { %2784 = vrot.lane.b32.xlu1 %v2783_v6, %s3106_s4  ;;  %v3000_v6 = vld [vmem:[#allocation7 + $0x128] sm:$0xff]  }
 0x319   :  { %v2770_v7 = vpop.permute.xlu0 %2769 }
 0x31a   :  { %v2772_v8 = vunpack.i.h.bf16 %v2770_v7  ;;  %v2771_v9 = vunpack.i.l.bf16 %v2770_v7  ;;  %v3001_v7 = vld [vmem:[#allocation7 + $0x170] sm:$0xff]  }
 0x31b   :  { %v2780_v34 = vpop.permute.xlu1 %2779 }
 0x31c   :  { %v1417_v10 = vsel %vm1354_vm3, %v2772_v8, %v2771_v9  ;;  %v1420_v11 = vsel %vm1354_vm3, %v2771_v9, 0.0  ;;  %v2781_v38 = vunpack.i.l.bf16 %v2780_v34  ;;  %v2782_v2 = vunpack.i.h.bf16 %v2780_v34 }
 0x31d   :  { %v1421_v12 = vmax.f32 %v1409_v37, %v1417_v10  ;;  %v1422_v13 = vmax.f32 %v1410_v43, %v1420_v11  ;;  %v2775_v14 = vpop.permute.xlu0 %2774  ;;  %v2986_v43 = vld [vmem:[#allocation7 + $0x30] sm:$0xff]  }
 0x31e   :  { %v2776_v15 = vunpack.i.l.bf16 %v2775_v14  ;;  %v2777_v37 = vunpack.i.h.bf16 %v2775_v14  ;;  %v1761_v42 = vsel %vm1354_vm3, %v2781_v38, 0.0  ;;  %v1758_v8 = vsel %vm1354_vm3, %v2782_v2, %v2781_v38  ;;  %v3002_v10 = vld [vmem:[#allocation7 + $0x130] sm:$0xff]   ;;  %v3004_v14 = vld [vmem:[#allocation7 + $0x138] sm:$0xff]  }
 0x31f   :  { %v1423_v16 = vmax.f32 %v1421_v12, 0.0  ;;  %v1424_v17 = vmax.f32 %v1422_v13, 0.0  ;;  %v1763_v46 = vmax.f32 %v3455_v53, %v1761_v42  ;;  %v2994_v53 = vld [vmem:[#allocation7 + $0x110] sm:$0xff]   ;;  %v2785_v60 = vpop.permute.xlu1 %2784  ;;  %v1762_v11 = vmax.f32 %v3453_v48, %v1758_v8  ;;  %v3003_v12 = vld [vmem:[#allocation7 + $0x178] sm:$0xff]  }
 0x320   :  { %v1358_v18 = vsel %vm1354_vm3, %v2776_v15, 0.0  ;;  %v1355_v41 = vsel %vm1354_vm3, %v2777_v37, %v2776_v15  ;;  %v2786_v63 = vunpack.i.l.bf16 %v2785_v60  ;;  %v3009_v48 = vld [vmem:[#allocation7 + $0x1d0] sm:$0xff]  }
 0x321   :  { %v1425_v19 = vpack.c.bf16 %v1423_v16, %v1423_v16  ;;  %v1360_v20 = vmax.f32 %v1347_v0, %v1358_v18  ;;  %v1426_v21 = vpack.c.bf16 %v1424_v17, %v1424_v17  ;;  %v1359_v44 = vmax.f32 %v3457_v59, %v1355_v41  ;;  %v2995_v59 = vld [vmem:[#allocation7 + $0x158] sm:$0xff]   ;;  %v2998_v0 = vld [vmem:[#allocation7 + $0x120] sm:$0xff]   ;;  %v3024_v42 = vld [vmem:[%s3530_s7 + $0x18] sm:$0xff]  }
 0x322   :  { %v1765_v51 = vmax.f32 %v1763_v46, 0.0  ;;  %v1961_v4 = vsel %vm1354_vm3, %v2786_v63, 0.0  ;;  %v1764_v15 = vmax.f32 %v1762_v11, 0.0  ;;  %v3005_v16 = vld [vmem:[#allocation7 + $0x1c0] sm:$0xff]   ;;  %v3028_v46 = vld [vmem:[%s3530_s7 + $0x38] sm:$0xff]  }
 0x323   :  { %v1462_v22 = vrot.slane %v1425_v19, 2  ;;  %v1362_v23 = vmax.f32 %v1360_v20, 0.0  ;;  %v1463_v24 = vrot.slane %v1426_v21, 2  ;;  %v1361_v49 = vmax.f32 %v1359_v44, 0.0  ;;  %v3006_v18 = vld [vmem:[#allocation7 + $0x180] sm:$0xff]   ;;  %v3007_v20 = vld [vmem:[#allocation7 + $0x1c8] sm:$0xff]  }
 0x324   :  { %v1767_v56 = vpack.c.bf16 %v1765_v51, %v1765_v51  ;;  %v1963_v9 = vmax.f32 %v3464_v5, %v1961_v4  ;;  %v1766_v19 = vpack.c.bf16 %v1764_v15, %v1764_v15  ;;  %v3008_v5 = vld [vmem:[#allocation7 + $0x188] sm:$0xff]   ;;  %v3026_v44 = vld [vmem:[%s3530_s7 + $0x28] sm:$0xff]  }
 0x325   :  { %v1364_v26 = vpack.c.bf16 %v1362_v23, %v1362_v23  ;;  %1594 = vmatprep.mubr.bf16.mxu1 %v1463_v24  ;;  %v1363_v54 = vpack.c.bf16 %v1361_v49, %v1361_v49  ;;  %v3011_v23 = vld [vmem:[#allocation7 + $0x1d8] sm:$0xff]   ;;  %v3023_v41 = vld [vmem:[%s3530_s7 + $0x10] sm:$0xff]  }
 0x326   :  { %1595 = vmatmul.mubr.bf16.vlgmr.msra.gmra.mrb[12].mxu1 %v1462_v22  ;;  %v1965_v13 = vmax.f32 %v1963_v9, 0.0  ;;  %v3010_v22 = vld [vmem:[#allocation7 + $0x190] sm:$0xff]   ;;  %v3012_v24 = vld [vmem:[#allocation7 + $0x198] sm:$0xff]  }
 0x327   :  { %2649 = vmatpush3.bf16.msra.mxu1 %v2974_v25  ;;  %1730 = vmatprep.mubr.bf16.mxu1 %v1364_v26  ;;  %v3013_v25 = vld [vmem:[#allocation7 + $0x1e0] sm:$0xff]   ;;  %v2787_v26 = vunpack.i.h.bf16 %v2785_v60 }
 0x328   :  { %2650 = vmatprep.subr.bf16.mxu1 %v2975_v27  ;;  %v1967_v17 = vpack.c.bf16 %v1965_v13, %v1965_v13  ;;  %v3014_v27 = vld [vmem:[#allocation7 + $0x1a0] sm:$0xff]   ;;  %v2541_v13 = vld [vmem:[%s3531_s8] ss:$0 sm:$0xff] }
 0x32a   :  { %v2004_v21 = vrot.slane %v1967_v17, 2 }
 0x32b   :  { %2651 = vmatpush3.bf16.msra.mxu1 %v2976_v28  ;;  %v3015_v28 = vld [vmem:[#allocation7 + $0x1e8] sm:$0xff]  }
 0x32c   :  { %2652 = vmatprep.subr.bf16.mxu1 %v2977_v29  ;;  %v1958_v29 = vsel %vm1354_vm3, %v2787_v26, %v2786_v63 }
 0x32f   :  { %2653 = vmatpush3.bf16.msra.mxu1 %v2978_v30  ;;  %v3016_v30 = vld [vmem:[#allocation7 + $0x1a8] sm:$0xff]  }
 0x330   :  { %2654 = vmatprep.subr.bf16.mxu1 %v2979_v31  ;;  %v1962_v31 = vmax.f32 %v3461_v3, %v1958_v29  ;;  %v3022_v3 = vld [vmem:[%s3530_s7 + $0x8] sm:$0xff]  }
 0x332   :  { %v1964_v34 = vmax.f32 %v1962_v31, 0.0 }
 0x333   :  { %2655 = vmatpush3.bf16.msra.mxu1 %v2980_v32  ;;  %v3017_v32 = vld [vmem:[#allocation7 + $0x1f0] sm:$0xff]  }
 0x334   :  { %2656 = vmatprep.subr.bf16.mxu1 %v2981_v33  ;;  %v3018_v33 = vld [vmem:[#allocation7 + $0x1b0] sm:$0xff]   ;;  %v1966_v37 = vpack.c.bf16 %v1964_v34, %v1964_v34 }
 0x336   :  { %v2003_v38 = vrot.slane %v1966_v37, 2 }
 0x337   :  { %2657 = vmatpush3.bf16.msra.mxu1 %v2982_v35  ;;  %v3019_v35 = vld [vmem:[#allocation7 + $0x1f8] sm:$0xff]  }
 0x338   :  { %2658 = vmatprep.subr.bf16.mxu1 %v2983_v36  ;;  %v3020_v36 = vld [vmem:[#allocation7 + $0x1b8] sm:$0xff]  }
 0x33b   :  { %2659 = vmatpush3.bf16.msra.mxu1 %v2984_v39  ;;  %v3021_v39 = vld [vmem:[%s3530_s7] sm:$0xff]  }
 0x33c   :  { %2660 = vmatprep.subr.bf16.mxu1 %v2985_v40  ;;  %v3107_v40 = vmov 0.0  }
 0x33f   :  { %2661 = vmatpush3.bf16.msra.mxu1 %v2986_v43  ;;  %v3025_v43 = vld [vmem:[%s3530_s7 + $0x20] sm:$0xff]  }
 0x340   :  { %2662 = vmatprep.subr.bf16.mxu1 %v2987_v45  ;;  %v3027_v45 = vld [vmem:[%s3530_s7 + $0x30] sm:$0xff]  }
 0x343   :  { %2663 = vmatpush3.bf16.msra.mxu1 %v2988_v47 }
 0x344   :  { %2670 = vmatprep.subr.bf16.mxu1 %v2989_v50 }
 0x346   :  { %1731 = vmatmul.mubr.bf16.vlgmr.msra.gmra.mrb[16].mxu1 %v1363_v54 }
 0x347   :  { %2671 = vmatpush3.bf16.msra.mxu1 %v2990_v52  ;;  %1929 = vmatprep.mubr.bf16.mxu1 %v1767_v56 }
 0x348   :  { %2672 = vmatprep.subr.bf16.mxu1 %v2991_v55 }
 0x34b   :  { %2673 = vmatpush3.bf16.msra.mxu1 %v2992_v57 }
 0x34c   :  { %2674 = vmatprep.subr.bf16.mxu1 %v2993_v58 }
 0x34f   :  { %2675 = vmatpush3.bf16.msra.mxu1 %v2994_v53 }
 0x350   :  { %2676 = vmatprep.subr.bf16.mxu1 %v2995_v59 }
 0x353   :  { %2677 = vmatpush3.bf16.msra.mxu1 %v2996_v61 }
 0x354   :  { %2678 = vmatprep.subr.bf16.mxu1 %v2997_v62 }
 0x357   :  { %2679 = vmatpush3.bf16.msra.mxu1 %v2998_v0 }
 0x358   :  { %2680 = vmatprep.subr.bf16.mxu1 %v2999_v1 }
 0x35b   :  { %2681 = vmatpush3.bf16.msra.mxu1 %v3000_v6 }
 0x35c   :  { %2682 = vmatprep.subr.bf16.mxu1 %v3001_v7  ;;  %v2540_v7 = vld [vmem:[%s3529_s6] ss:$0 sm:$0xff]  ;;  %s3073_s6 = scalar_lea.vmem %s2273_s12, 32 }
 0x35d   :  { %p3074_p2 = scmp.ne.s32.totalorder %s2273_s12, %s3073_s6  ;;  %p3079_p4 = scmp.lt.s32.totalorder %s3073_s6, %s3073_s6 }
 0x35f   :  { %2683 = vmatpush3.bf16.msra.mxu1 %v3002_v10  ;;  %p3080_p5 = por %p3079_p4, %p3078_p3 }
 0x360   :  { %2684 = vmatprep.subr.bf16.mxu1 %v3003_v12 }
 0x361   :  { %p3081_p6 = pnand %p3080_p5, %p3074_p2 }
 0x363   :  { %2685 = vmatpush3.bf16.msra.mxu1 %v3004_v14 }
 0x364   :  { %2692 = vmatprep.subr.bf16.mxu1 %v3005_v16 }
 0x366   :  { %1930 = vmatmul.mubr.bf16.vlgmr.msra.gmra.mrb[20].mxu1 %v1766_v19 }
 0x367   :  { %2693 = vmatpush3.bf16.msra.mxu1 %v3006_v18  ;;  %2135 = vmatprep.mubr.bf16.mxu1 %v2004_v21 }
 0x368   :  { %2694 = vmatprep.subr.bf16.mxu1 %v3007_v20 }
 0x36b   :  { %2695 = vmatpush3.bf16.msra.mxu1 %v3008_v5 }
 0x36c   :  { %2696 = vmatprep.subr.bf16.mxu1 %v3009_v48 }
 0x36f   :  { %2697 = vmatpush3.bf16.msra.mxu1 %v3010_v22 }
 0x370   :  { %2698 = vmatprep.subr.bf16.mxu1 %v3011_v23 }
 0x373   :  { %2699 = vmatpush3.bf16.msra.mxu1 %v3012_v24 }
 0x374   :  { %2700 = vmatprep.subr.bf16.mxu1 %v3013_v25 }
 0x377   :  { %2701 = vmatpush3.bf16.msra.mxu1 %v3014_v27 }
 0x378   :  { %2702 = vmatprep.subr.bf16.mxu1 %v3015_v28 }
 0x37b   :  { %2703 = vmatpush3.bf16.msra.mxu1 %v3016_v30 }
 0x37c   :  { %2704 = vmatprep.subr.bf16.mxu1 %v3017_v32 }
 0x37f   :  { %2705 = vmatpush3.bf16.msra.mxu1 %v3018_v33 }
 0x380   :  { %2706 = vmatprep.subr.bf16.mxu1 %v3019_v35 }
 0x383   :  { %2707 = vmatpush3.bf16.msra.mxu1 %v3020_v36 }
 0x384   :  { %2723 = vmatprep.subr.bf16.mxu1 %v3107_v40 }
 0x386   :  { %2136 = vmatmul.mubr.bf16.vlgmr.msra.gmra.mrb[24].mxu1 %v2003_v38 }
 0x387   :  { %2724 = vmatpush3.bf16.msra.mxu1 %v3021_v39  ;;  %2739 = vmatprep.mubr.msk.bf16.mxu1 %vm3108_vm4, %v3107_v40 }
 0x388   :  { %2725 = vmatprep.subr.bf16.mxu1 %v3107_v40 }
 0x38b   :  { %2726 = vmatpush3.bf16.msra.mxu1 %v3022_v3 }
 0x38c   :  { %2727 = vmatprep.subr.bf16.mxu1 %v3107_v40 }
 0x38f   :  { %2728 = vmatpush3.bf16.msra.mxu1 %v3023_v41 }
 0x390   :  { %2729 = vmatprep.subr.bf16.mxu1 %v3107_v40 }
 0x393   :  { %2730 = vmatpush3.bf16.msra.mxu1 %v3024_v42 }
 0x394   :  { %2731 = vmatprep.subr.bf16.mxu1 %v3107_v40 }
 0x397   :  { %2732 = vmatpush3.bf16.msra.mxu1 %v3025_v43 }
 0x398   :  { %2733 = vmatprep.subr.bf16.mxu1 %v3107_v40 }
 0x39b   :  { %2734 = vmatpush3.bf16.msra.mxu1 %v3026_v44 }
 0x39c   :  { %2735 = vmatprep.subr.bf16.mxu1 %v3107_v40 }
 0x39f   :  { %2736 = vmatpush3.bf16.msra.mxu1 %v3027_v45 }
 0x3a0   :  { %2737 = vmatprep.subr.bf16.mxu1 %v3107_v40 }
 0x3a3   :  { %2738 = vmatpush3.bf16.msra.mxu1 %v3028_v46 }
 0x3f9   :  { %v2642_v47 = vpop.f32.mrb[12].mxu1 }
 0x3fa   :  { %v2643_v49 = vpop.f32.mrb[13].mxu1 }
 0x3fb   :  { %v2644_v50 = vadd.f32 %v2643_v49, %v2642_v47  ;;  %v2645_v51 = vpop.f32.mrb[14].mxu1 }
 0x3fc   :  { %v2646_v52 = vpop.f32.mrb[15].mxu1 }
 0x419   :  { %v2664_v54 = vpop.f32.mrb[16].mxu1 }
 0x41a   :  { %v2665_v55 = vpop.f32.mrb[17].mxu1 }
 0x41b   :  { %v2666_v56 = vadd.f32 %v2665_v55, %v2664_v54  ;;  %v2667_v57 = vpop.f32.mrb[18].mxu1 }
 0x41c   :  { %v2668_v58 = vpop.f32.mrb[19].mxu1 }
 0x41d   :  { %v1733_v53 = vadd.f32 %v2666_v56, %v2644_v50 }
 0x439   :  { %v2686_v59 = vpop.f32.mrb[20].mxu1 }
 0x43a   :  { %v2687_v60 = vpop.f32.mrb[21].mxu1 }
 0x43b   :  { %v2688_v61 = vadd.f32 %v2687_v60, %v2686_v59  ;;  %v2689_v62 = vpop.f32.mrb[22].mxu1 }
 0x43c   :  { %v2690_v63 = vpop.f32.mrb[23].mxu1 }
 0x43d   :  { %v1937_v0 = vadd.f32 %v2688_v61, %v1733_v53 }
 0x459   :  { %v2708_v1 = vpop.f32.mrb[24].mxu1 }
 0x45a   :  { %v2709_v2 = vpop.f32.mrb[25].mxu1 }
 0x45b   :  { %v2710_v4 = vadd.f32 %v2709_v2, %v2708_v1  ;;  %v2711_v6 = vpop.f32.mrb[26].mxu1 }
 0x45c   :  { %v2712_v8 = vpop.f32.mrb[27].mxu1 }
 0x45d   :  { %v2143_v9 = vadd.f32 %v2710_v4, %v1937_v0 }
 0x45f   :  { %v2151_v10 = vadd.f32 %v2540_v7, %v2143_v9 }
 0x461   :  { %v2152_v11 = vmax.f32 %v2151_v10, 0.0 }
 0x463   :  { %v2153_v12 = vpack.c.bf16 %v2152_v11, %v2152_v11 }
 0x465   :  { %2740 = vmatmul.mubr.bf16.vlgmr.msra.gmra.mrb[28].mxu1 %v2153_v12 }
 0x538   :  { %v2259_v14 = vpop.f32.mrb[28].mxu1 }
 0x539   :  { %v2260_v15 = vadd.f32 %v2541_v13, %v2259_v14  ;;  %v2741_v16 = vpop.f32.mrb[29].mxu1 }
 0x53a   :  { %v2262_v17 = vpop.f32.mrb[30].mxu1 }
 0x53b   :  { %2265 = vst [vmem:[#allocation9] sm:$0x3] %v2260_v15  ;;  %v2742_v18 = vpop.f32.mrb[31].mxu1 }
 0x53c   :  { %3084 = shalt.err (!%p3081_p6)
}
 0x53d   :  { %s3085_s8 = scalar_lea.hbm %s3532_s9, 32 }
 0x53e   :  { %p3086_p7 = scmp.ne.s32.totalorder %s3532_s9, %s3085_s8  ;;  %p3089_p8 = scmp.lt.u32.totalorder %s3085_s8, %s3532_s9 }
 0x540   :  { %p3091_p9 = pnand %p3089_p8, %p3086_p7 }
 0x542   :  { %3094 = shalt.err (!%p3091_p9)
}
 0x543   :  { %2275 = dma.vmem_to_hbm [thread:$0]  %s2273_s12, 32, %s3532_s9, [#allocation6]  }
 0x544   :  { %3099 = dma.done.wait [#allocation6], 32  }
 0x545   :  { %3100 = vsyncadd [#allocation6], 4294967264 }
 0x546   :  { %2279 = vsyncpa [#allocation5], 1 }
 0x547   :  { %2280 = vsyncpa [#allocation8], 1 }
 0x548   :  { %2281 = vsyncpa [#allocation6], 1 }

</bundles_post_ra>
